<compile_context>
chip_gen: v7x
topology: tpu7x:2x2x1
jax: 0.10.0
libtpu: 0.0.40
codegen_flags: <defaults>
</compile_context>

<pallas_src>
import functools
import math

import numpy as np

import jax
import jax.numpy as jnp
from jax import lax
from jax.experimental import pallas as pl
from jax.experimental.pallas import tpu as pltpu

# ---------------- synthetic hyper-parameters ----------------
BATCH = 2
ENC_D = 32            # hp.Encoder.Size
SIZE = 32             # hp.F0_Predictor.Size
T = 128               # F0_t == Dec_t
STACK = 3             # hp.F0_Predictor.Stack
KERNEL_SIZE = 3       # hp.F0_Predictor.Kernel_Size
DILATION_CYCLE = 2    # hp.F0_Predictor.Dilation_Cycle
DILATIONS = tuple(2 ** (i % DILATION_CYCLE) for i in range(STACK))

# Distinct non-zero tap offsets across all stacks (off = (k-1)*dilation).
EDGE_OFFSETS = tuple(sorted(
    {(k - 1) * d for d in DILATIONS for k in range(KERNEL_SIZE)} - {0}))
EDGE_OFF_IDX = {off: i for i, off in enumerate(EDGE_OFFSETS)}
N_OFF = len(EDGE_OFFSETS)

# The roll+mask conv scheme is only valid while every non-zero tap offset is
# strictly inside one frame; the baked masks then cover every batch-boundary
# and wraparound crossing for any block lane extent >= T.
assert all(0 < abs(off) < T for off in EDGE_OFFSETS), \
    "edge masks do not cover every dilated conv tap offset"
assert SIZE % 8 == 0, "channel count must stay sublane-aligned"


# ---------------- activation helpers ----------------
def _gelu_tanh(x):
    # torch.nn.GELU(approximate='tanh')
    c = math.sqrt(2.0 / math.pi)
    return 0.5 * x * (1.0 + jnp.tanh(c * (x + 0.044715 * x * x * x)))


# ---------------- Pallas kernel (channel-major: [C, lanes]) ----------------
def _network_kernel(x0_ref, mask_ref, wz_ref, zb_ref, pw_ref, cb_ref,
                    head_ref, fp2b_ref, out_ref):
    """Residual stacks + final projection on one [C, L] channel-major block.

    L is either B*T (single-step batch-fold) or T (per-batch grid block).
    Matmuls are [M, C] x [C, L] (lane-dense N); channel splits are free
    sublane slices; dilated conv taps are lane rolls masked at frame edges.
    In-kernel dots use the default Mosaic f32 precision (documented choice,
    validated against the HIGHEST-precision reference at 1e-3).
    """
    f32 = jnp.float32
    C = SIZE
    L = x0_ref.shape[1]

    x = x0_ref[...]                              # [C, L] residual stream
    skips = jnp.zeros((C, L), f32)
    inv_sqrt2 = 1.0 / math.sqrt(2.0)

    for i in range(STACK):
        d = DILATIONS[i]
        # Hoisted bias: cond projection + (time-constant) step projection
        # pushed through the conv taps + conv_b + cond_b, all precomputed.
        z = zb_ref[i]                            # [2C, L]
        for k in range(KERNEL_SIZE):
            off = (k - 1) * d
            if off == 0:
                tap = x
            else:
                tap = (pltpu.roll(x, shift=(-off) % L, axis=1)
                       * mask_ref[EDGE_OFF_IDX[off]])
            z = z + jnp.dot(wz_ref[i * KERNEL_SIZE + k], tap,
                            preferred_element_type=f32)

        # Fused_Gate: tanh(z_hi) * sigmoid(z_lo); sigmoid via tanh so each
        # gate half costs a single EUP op.
        gate = jnp.tanh(z[:C]) * (0.5 * (jnp.tanh(0.5 * z[C:]) + 1.0))

        p = jnp.dot(pw_ref[i], gate, preferred_element_type=f32) + cb_ref[i]   # [2C, L]
        x = (p[:C] + x) * inv_sqrt2
        skips = skips + p[C:]

    h = skips * (1.0 / math.sqrt(STACK))
    head = head_ref[...]                         # [C+1, C]: fp1_w^T rows, fp2 row
    fp1_b = cb_ref[STACK][:C]                    # [C, 1]
    h = _gelu_tanh(jnp.dot(head[:C, :], h, preferred_element_type=f32) + fp1_b)
    out = jnp.dot(head[C:, :], h, preferred_element_type=f32) + fp2b_ref[...]   # [1, L]
    out_ref[...] = out.astype(out_ref.dtype)


# ---------------- baked (numpy) time masks ----------------
def _edge_time_masks(time, reps):
    t = np.arange(time)
    m = np.stack([((t + off >= 0) & (t + off < time)).astype(np.float32)
                  for off in EDGE_OFFSETS], axis=0)[:, None, :]   # [N_OFF, 1, time]
    return np.tile(m, (1, 1, reps))


def _tap_time_mask(time):
    t = np.arange(time)
    m = np.zeros((STACK, KERNEL_SIZE, time), np.float32)
    for s, dil in enumerate(DILATIONS):
        for k in range(KERNEL_SIZE):
            off = (k - 1) * dil
            m[s, k] = ((t + off >= 0) & (t + off < time)).astype(np.float32)
    return m


# ---------------- param-only preprocessing (done once, not per call) ----------------
def prepare_network_params(params, batch=BATCH, time=T):
    C = SIZE
    conv_w_t = jnp.transpose(params["conv_w"], (0, 1, 3, 2))               # [S,K,2C,C]
    col_bias = jnp.concatenate(
        [jnp.transpose(params["proj_b"], (0, 2, 1)),                       # [S,2C,1]
         jnp.zeros((1, 2 * C, 1), jnp.float32).at[0, :C, 0].set(params["fp1_b"][0])],
        axis=0)                                                            # [S+1,2C,1]
    return {
        # prenet (channel-major columns)
        "prenet_w_col": params["prenet_w"][0][:, None],                    # [C,1]
        "prenet_b_col": params["prenet_b"][0][:, None],                    # [C,1]
        # step FFN (stays in the XLA wrapper)
        "sf_w1": params["sf_w1"], "sf_b1": params["sf_b1"],
        "sf_w2": params["sf_w2"], "sf_b2": params["sf_b2"],
        "step_w_t": jnp.transpose(params["step_w"], (0, 2, 1)),            # [S,C,C]
        "step_b_t": params["step_b"][:, 0, :],                             # [S,C]
        # hoisted condition projection + folded biases
        "cond_w_t": jnp.transpose(params["cond_w"], (0, 2, 1)),            # [S,2C,E]
        "bias0_t": jnp.transpose(params["conv_b"] + params["cond_b"], (0, 2, 1)),  # [S,2C,1]
        # kernel operands
        "conv_w_t": conv_w_t,
        "wz_flat": conv_w_t.reshape(STACK * KERNEL_SIZE, 2 * C, C),        # [S*K,2C,C]
        "proj_w_t": jnp.transpose(params["proj_w"], (0, 2, 1)),            # [S,2C,C]
        "col_bias": col_bias,                                              # [S+1,2C,1]
        "head": jnp.concatenate([params["fp1_w"].T, params["fp2_w"].T], axis=0),  # [C+1,C]
        "fp2_b": params["fp2_b"],                                          # [1,1]
        # baked time masks
        "mask_t": jnp.asarray(_edge_time_masks(time, 1)),                  # [N_OFF,1,T]
        "mask_bt": jnp.asarray(_edge_time_masks(time, batch)),             # [N_OFF,1,B*T]
        "tap_mask": jnp.asarray(_tap_time_mask(time)),                     # [S,K,T]
    }


# ---------------- network forward (wrapper + pallas_call) ----------------
@functools.partial(jax.jit, static_argnames=("batch_grid",))
def network_forward(prep, noised_f0s, encodings, steps_emb, batch_grid=False):
    """noised_f0s: [B,T], encodings: [B,Enc_d,T] (NCW), steps_emb: [B,SIZE] -> [B,T]."""
    B, _, T_ = encodings.shape
    C = SIZE
    BT = B * T_
    hi = lax.Precision.HIGHEST

    assert prep["mask_bt"].shape[-1] == BT and prep["mask_t"].shape[-1] == T_

    # prenet built directly channel-major (no transpose): Conv1d(1->C,k=1)+GELU(tanh)
    x0_cm = _gelu_tanh(prep["prenet_w_col"] * noised_f0s.reshape(1, BT)
                       + prep["prenet_b_col"])                               # [C,BT]

    # step FFN (exact GELU) -> per-stack step projection; the step signal is
    # constant over time, so its dilated-conv response folds exactly into
    # z_bias (edge taps handled by the baked tap masks).
    h1 = jax.nn.gelu(jnp.einsum("bc,cf->bf", steps_emb, prep["sf_w1"], precision=hi)
                     + prep["sf_b1"], approximate=False)
    sfeat = jnp.einsum("bf,fc->bc", h1, prep["sf_w2"], precision=hi) + prep["sf_b2"]
    s_blk = (jnp.einsum("soc,bc->sob", prep["step_w_t"], sfeat, precision=hi)
             + prep["step_b_t"][:, :, None])                                # [S,C,B]
    s_tap = jnp.einsum("skoc,scb->skob", prep["conv_w_t"], s_blk, precision=hi)    # [S,K,2C,B]
    z_step = jnp.einsum("skob,skt->sobt", s_tap, prep["tap_mask"], precision=hi)   # [S,2C,B,T]

    # hoisted condition projection (recurrence-independent, out of the kernel)
    z_cond = jnp.einsum("soe,bet->sobt", prep["cond_w_t"], encodings, precision=hi)

    z_bias = (z_cond + z_step).reshape(STACK, 2 * C, BT) + prep["bias0_t"]   # [S,2C,BT]

    use_bg = bool(batch_grid) and (T_ % 128 == 0)
    if use_bg:
        # One batch element per grid step; on v7x the steps shard across the
        # two TensorCores, weights stay resident (constant index maps).
        grid = (B,)
        masks = prep["mask_t"]
        in_specs = [
            pl.BlockSpec((C, T_), lambda b: (0, b)),
            pl.BlockSpec((N_OFF, 1, T_), lambda b: (0, 0, 0)),
            pl.BlockSpec(prep["wz_flat"].shape, lambda b: (0, 0, 0)),
            pl.BlockSpec((STACK, 2 * C, T_), lambda b: (0, 0, b)),
            pl.BlockSpec(prep["proj_w_t"].shape, lambda b: (0, 0, 0)),
            pl.BlockSpec(prep["col_bias"].shape, lambda b: (0, 0, 0)),
            pl.BlockSpec(prep["head"].shape, lambda b: (0, 0)),
            pl.BlockSpec(prep["fp2_b"].shape, lambda b: (0, 0)),
        ]
        out_specs = pl.BlockSpec((1, T_), lambda b: (0, b))
        semantics = ("parallel",)
    else:
        # Single grid step on the fused [C, B*T] block: best on single-TC
        # v5e/v6e (fully packed lanes, no per-step overhead).
        grid = (1,)
        masks = prep["mask_bt"]

        def full(arr):
            nd = arr.ndim
            return pl.BlockSpec(arr.shape, lambda g, _nd=nd: (0,) * _nd)

        in_specs = [full(x0_cm), full(masks), full(prep["wz_flat"]), full(z_bias),
                    full(prep["proj_w_t"]), full(prep["col_bias"]),
                    full(prep["head"]), full(prep["fp2_b"])]
        out_specs = pl.BlockSpec((1, BT), lambda g: (0, 0))
        semantics = ("arbitrary",)

    out = pl.pallas_call(
        _network_kernel,
        out_shape=jax.ShapeDtypeStruct((1, BT), jnp.float32),
        grid_spec=pltpu.PrefetchScalarGridSpec(
            num_scalar_prefetch=0,
            grid=grid,
            in_specs=in_specs,
            out_specs=out_specs),
        compiler_params=pltpu.CompilerParams(dimension_semantics=semantics),
    )(x0_cm, masks, prep["wz_flat"], z_bias, prep["proj_w_t"],
      prep["col_bias"], prep["head"], prep["fp2_b"])
    return out.reshape(B, T_)


@functools.lru_cache(maxsize=1)
def _default_batch_grid():
    # v7x has 2 TensorCores per chip: shard the batch across them.  v5e/v6e
    # have a single TC, where the fused single-step path is best.
    try:
        kind = jax.devices()[0].device_kind.lower()
    except Exception:
        return False
    return "v7" in kind


# ---------------- RectifiedFlow.forward glue ----------------
def rectified_flow_forward(prep, encodings, f0s, key, batch_grid=None):
    """encodings: [B, Enc_d, Dec_t] (NCW as in PyTorch), f0s: [B, F0_t]."""
    B = encodings.shape[0]
    k_t, k_n = jax.random.split(key)
    # Scheduler == 'Uniform', Use_CFG == False, Use_OT == False
    timesteps = jax.random.uniform(k_t, (B,), jnp.float32)            # torch.rand
    noises = jax.random.normal(k_n, f0s.shape, jnp.float32)           # torch.randn_like
    t = timesteps[:, None]
    noised_f0s = t * f0s + (1.0 - t) * noises
    flows = f0s - noises

    # Step_Embedding (sinusoidal); the step FFN is hoisted into network_forward.
    half = SIZE // 2
    div_term = jnp.exp(jnp.arange(half, dtype=jnp.float32)
                       * (-math.log(10000.0) / (half - 1)))
    se = 1000.0 * timesteps[:, None] * div_term[None, :]
    steps_emb = jnp.concatenate([jnp.sin(se), jnp.cos(se)], axis=1)   # [B, SIZE]

    if batch_grid is None:
        batch_grid = _default_batch_grid()
    prediction_flows = network_forward(prep, noised_f0s, encodings, steps_emb,
                                       batch_grid=batch_grid)
    return flows, prediction_flows, (noised_f0s, steps_emb)


# ---------------- pure-JAX reference of Network.forward (for self-check) ----------------
def network_ref(params, noised_f0s, enc_t, steps_emb):
    P = lax.Precision.HIGHEST
    dot = functools.partial(jnp.einsum, precision=P)
    C = SIZE

    x = _gelu_tanh(noised_f0s[:, :, None] * params["prenet_w"][0][None, None, :]
                   + params["prenet_b"][0][None, None, :])                       # [B,T,C]

    h1 = jax.nn.gelu(dot("bc,cf->bf", steps_emb, params["sf_w1"]) + params["sf_b1"],
                     approximate=False)
    steps_feat = dot("bf,fc->bc", h1, params["sf_w2"]) + params["sf_b2"]         # [B,C]

    skips = jnp.zeros_like(x)
    for i in range(STACK):
        d = DILATIONS[i]
        pad = d * (KERNEL_SIZE - 1) // 2
        cond = dot("bte,eo->bto", enc_t, params["cond_w"][i]) + params["cond_b"][i]
        sstep = dot("bc,co->bo", steps_feat, params["step_w"][i]) + params["step_b"][i]
        xin = x + sstep[:, None, :]
        xp = jnp.pad(xin, ((0, 0), (pad, pad), (0, 0)))
        acc = jnp.zeros((x.shape[0], x.shape[1], 2 * C), jnp.float32)
        for k in range(KERNEL_SIZE):
            tap = xp[:, k * d:k * d + x.shape[1], :]
            acc = acc + dot("btc,co->bto", tap, params["conv_w"][i, k])
        z = acc + params["conv_b"][i] + cond
        gate = jnp.tanh(z[..., :C]) * jax.nn.sigmoid(z[..., C:])
        p = dot("btc,co->bto", gate, params["proj_w"][i]) + params["proj_b"][i]
        x = (p[..., :C] + x) / math.sqrt(2.0)
        skips = skips + p[..., C:]

    h = skips / math.sqrt(STACK)
    h = _gelu_tanh(dot("btc,co->bto", h, params["fp1_w"]) + params["fp1_b"])
    out = dot("btc,co->bto", h, params["fp2_w"]) + params["fp2_b"]
    return out[:, :, 0]


# ---------------- deterministic parameter init ----------------
def init_params(key):
    ks = jax.random.split(key, 18)

    def nrm(k, shape, scale=0.1):
        return scale * jax.random.normal(k, shape, jnp.float32)

    C, E, S, K = SIZE, ENC_D, STACK, KERNEL_SIZE
    return {
        "prenet_w": nrm(ks[0], (1, C)),            # Conv1d(1->C, k=1)
        "prenet_b": nrm(ks[1], (1, C)),
        "sf_w1": nrm(ks[2], (C, 4 * C)),           # Conv1d(C->4C, k=1)
        "sf_b1": nrm(ks[3], (1, 4 * C)),
        "sf_w2": nrm(ks[4], (4 * C, C)),           # Conv1d(4C->C, k=1)
        "sf_b2": nrm(ks[5], (1, C)),
        "cond_w": nrm(ks[6], (S, E, 2 * C)),       # per-block Conv1d(Enc_d->2C, k=1)
        "cond_b": nrm(ks[7], (S, 1, 2 * C)),
        "step_w": nrm(ks[8], (S, C, C)),           # per-block Conv1d(C->C, k=1)
        "step_b": nrm(ks[9], (S, 1, C)),
        "conv_w": nrm(ks[10], (S, K, C, 2 * C)),   # per-block dilated Conv1d(C->2C, k=K)
        "conv_b": nrm(ks[11], (S, 1, 2 * C)),
        "proj_w": nrm(ks[12], (S, C, 2 * C)),      # per-block Conv1d(C->2C, k=1)
        "proj_b": nrm(ks[13], (S, 1, 2 * C)),
        "fp1_w": nrm(ks[14], (C, C)),              # final Conv1d(C->C, k=1)
        "fp1_b": nrm(ks[15], (1, C)),
        # TODO(synk): reference zeros projection[-1].weight at init; use a small
        # random weight here so the kernel's full compute path is exercised.
        "fp2_w": nrm(ks[16], (C, 1)),              # final Conv1d(C->1, k=1)
        "fp2_b": nrm(ks[17], (1, 1)),
    }


if __name__ == "__main__":
    key = jax.random.PRNGKey(0)
    k_param, k_enc, k_f0, k_fwd = jax.random.split(key, 4)

    params = init_params(k_param)
    prep = prepare_network_params(params)          # param-only prep, done once
    encodings = jax.random.normal(k_enc, (BATCH, ENC_D, T), jnp.float32)  # [B, Enc_d, Dec_t]
    f0s = jax.random.normal(k_f0, (BATCH, T), jnp.float32)                # [B, F0_t]

    flows, pred, (noised_f0s, steps_emb) = rectified_flow_forward(
        prep, encodings, f0s, k_fwd)
    flows = jax.block_until_ready(flows)
    pred = jax.block_until_ready(pred)

    assert flows.shape == (BATCH, T)
    assert pred.shape == (BATCH, T)

    enc_t = jnp.transpose(encodings, (0, 2, 1))                           # [B, T, Enc_d]
    ref = network_ref(params, noised_f0s, enc_t, steps_emb)

    def _check(name, got):
        if not jnp.allclose(got, ref, atol=1e-3, rtol=1e-3):
            raise AssertionError(
                f"{name} mismatch, max abs err = "
                f"{float(jnp.max(jnp.abs(got - ref)))}")

    # Validate both grid variants against the pure-JAX reference.
    _check("fused single-step kernel",
           jax.block_until_ready(network_forward(
               prep, noised_f0s, encodings, steps_emb, batch_grid=False)))
    _check("per-batch (v7x) grid kernel",
           jax.block_until_ready(network_forward(
               prep, noised_f0s, encodings, steps_emb, batch_grid=True)))
    _check("rectified_flow_forward output", pred)

    print("KERNEL_OK")
</pallas_src>

<mosaic_0001>
module attributes {stable_mosaic.version = 11 : i64} {
  func.func @_network_kernel(%arg0: i32, %arg1: memref<32x256xf32, #tpu.memory_space<vmem>>, %arg2: memref<4x1x256xf32, #tpu.memory_space<vmem>>, %arg3: memref<9x64x32xf32, #tpu.memory_space<vmem>>, %arg4: memref<3x64x256xf32, #tpu.memory_space<vmem>>, %arg5: memref<3x64x32xf32, #tpu.memory_space<vmem>>, %arg6: memref<4x64x1xf32, #tpu.memory_space<vmem>>, %arg7: memref<33x32xf32, #tpu.memory_space<vmem>>, %arg8: memref<1x1xf32, #tpu.memory_space<vmem>>, %arg9: memref<1x256xf32, #tpu.memory_space<vmem>>) attributes {dimension_semantics = [#tpu.dimension_semantics<arbitrary>], iteration_bounds = array<i64: 1>, scalar_prefetch = 0 : i64, scratch_operands = 0 : i64, tpu.core_type = #tpu.core_type<tc>, window_params = [{pipeline_mode = #tpu.pipeline_mode<synchronous>, transform_indices = @transform_0, window_bounds = array<i64: 32, 256>}, {pipeline_mode = #tpu.pipeline_mode<synchronous>, transform_indices = @transform_1, window_bounds = array<i64: 4, 1, 256>}, {pipeline_mode = #tpu.pipeline_mode<synchronous>, transform_indices = @transform_2, window_bounds = array<i64: 9, 64, 32>}, {pipeline_mode = #tpu.pipeline_mode<synchronous>, transform_indices = @transform_3, window_bounds = array<i64: 3, 64, 256>}, {pipeline_mode = #tpu.pipeline_mode<synchronous>, transform_indices = @transform_4, window_bounds = array<i64: 3, 64, 32>}, {pipeline_mode = #tpu.pipeline_mode<synchronous>, transform_indices = @transform_5, window_bounds = array<i64: 4, 64, 1>}, {pipeline_mode = #tpu.pipeline_mode<synchronous>, transform_indices = @transform_6, window_bounds = array<i64: 33, 32>}, {pipeline_mode = #tpu.pipeline_mode<synchronous>, transform_indices = @transform_7, window_bounds = array<i64: 1, 1>}, {pipeline_mode = #tpu.pipeline_mode<synchronous>, transform_indices = @transform_8, window_bounds = array<i64: 1, 256>}]} {
    %c0 = arith.constant 0 : index
    %c0_0 = arith.constant 0 : index
    %0 = vector.load %arg1[%c0, %c0_0] : memref<32x256xf32, #tpu.memory_space<vmem>>, vector<32x256xf32>
    %cst = arith.constant 0.000000e+00 : f32
    %1 = vector.broadcast %cst : f32 to vector<32x256xf32>
    %c0_1 = arith.constant 0 : index
    %c0_2 = arith.constant 0 : index
    %c0_3 = arith.constant 0 : index
    %2 = vector.load %arg4[%c0_1, %c0_2, %c0_3] : memref<3x64x256xf32, #tpu.memory_space<vmem>>, vector<1x64x256xf32>
    %3 = vector.shape_cast %2 : vector<1x64x256xf32> to vector<64x256xf32>
    %c1_i32 = arith.constant 1 : i32
    %4 = tpu.dynamic_rotate %0 by %c1_i32 dim 1 : vector<32x256xf32>, i32 -> vector<32x256xf32>
    %c1 = arith.constant 1 : index
    %c0_4 = arith.constant 0 : index
    %c0_5 = arith.constant 0 : index
    %5 = vector.load %arg2[%c1, %c0_4, %c0_5] : memref<4x1x256xf32, #tpu.memory_space<vmem>>, vector<1x1x256xf32>
    %6 = vector.shape_cast %5 : vector<1x1x256xf32> to vector<1x256xf32>
    %7 = vector.broadcast %6 : vector<1x256xf32> to vector<32x256xf32>
    %8 = arith.mulf %4, %7 : vector<32x256xf32>
    %c0_6 = arith.constant 0 : index
    %c0_7 = arith.constant 0 : index
    %c0_8 = arith.constant 0 : index
    %9 = vector.load %arg3[%c0_6, %c0_7, %c0_8] : memref<9x64x32xf32, #tpu.memory_space<vmem>>, vector<1x64x32xf32>
    %10 = vector.shape_cast %9 : vector<1x64x32xf32> to vector<64x32xf32>
    %cst_9 = arith.constant dense<0.000000e+00> : vector<64x256xf32>
    %11 = tpu.matmul %10, %8, %cst_9 {dimension_numbers = #tpu.dot_dimension_numbers<[1], [0], [0], [1], [0, 0, 1, 1], [], []>} : vector<64x32xf32>, vector<32x256xf32>, vector<64x256xf32> -> vector<64x256xf32>
    %12 = arith.addf %3, %11 : vector<64x256xf32>
    %c1_10 = arith.constant 1 : index
    %c0_11 = arith.constant 0 : index
    %c0_12 = arith.constant 0 : index
    %13 = vector.load %arg3[%c1_10, %c0_11, %c0_12] : memref<9x64x32xf32, #tpu.memory_space<vmem>>, vector<1x64x32xf32>
    %14 = vector.shape_cast %13 : vector<1x64x32xf32> to vector<64x32xf32>
    %cst_13 = arith.constant dense<0.000000e+00> : vector<64x256xf32>
    %15 = tpu.matmul %14, %0, %cst_13 {dimension_numbers = #tpu.dot_dimension_numbers<[1], [0], [0], [1], [0, 0, 1, 1], [], []>} : vector<64x32xf32>, vector<32x256xf32>, vector<64x256xf32> -> vector<64x256xf32>
    %16 = arith.addf %12, %15 : vector<64x256xf32>
    %c255_i32 = arith.constant 255 : i32
    %17 = tpu.dynamic_rotate %0 by %c255_i32 dim 1 : vector<32x256xf32>, i32 -> vector<32x256xf32>
    %c2 = arith.constant 2 : index
    %c0_14 = arith.constant 0 : index
    %c0_15 = arith.constant 0 : index
    %18 = vector.load %arg2[%c2, %c0_14, %c0_15] : memref<4x1x256xf32, #tpu.memory_space<vmem>>, vector<1x1x256xf32>
    %19 = vector.shape_cast %18 : vector<1x1x256xf32> to vector<1x256xf32>
    %20 = vector.broadcast %19 : vector<1x256xf32> to vector<32x256xf32>
    %21 = arith.mulf %17, %20 : vector<32x256xf32>
    %c2_16 = arith.constant 2 : index
    %c0_17 = arith.constant 0 : index
    %c0_18 = arith.constant 0 : index
    %22 = vector.load %arg3[%c2_16, %c0_17, %c0_18] : memref<9x64x32xf32, #tpu.memory_space<vmem>>, vector<1x64x32xf32>
    %23 = vector.shape_cast %22 : vector<1x64x32xf32> to vector<64x32xf32>
    %cst_19 = arith.constant dense<0.000000e+00> : vector<64x256xf32>
    %24 = tpu.matmul %23, %21, %cst_19 {dimension_numbers = #tpu.dot_dimension_numbers<[1], [0], [0], [1], [0, 0, 1, 1], [], []>} : vector<64x32xf32>, vector<32x256xf32>, vector<64x256xf32> -> vector<64x256xf32>
    %25 = arith.addf %16, %24 : vector<64x256xf32>
    %26 = vector.extract_strided_slice %25 {offsets = [0, 0], sizes = [32, 256], strides = [1, 1]} : vector<64x256xf32> to vector<32x256xf32>
    %27 = math.tanh %26 : vector<32x256xf32>
    %28 = vector.extract_strided_slice %25 {offsets = [32, 0], sizes = [32, 256], strides = [1, 1]} : vector<64x256xf32> to vector<32x256xf32>
    %cst_20 = arith.constant 5.000000e-01 : f32
    %29 = vector.broadcast %cst_20 : f32 to vector<32x256xf32>
    %30 = arith.mulf %29, %28 : vector<32x256xf32>
    %31 = math.tanh %30 : vector<32x256xf32>
    %cst_21 = arith.constant 1.000000e+00 : f32
    %32 = vector.broadcast %cst_21 : f32 to vector<32x256xf32>
    %33 = arith.addf %31, %32 : vector<32x256xf32>
    %cst_22 = arith.constant 5.000000e-01 : f32
    %34 = vector.broadcast %cst_22 : f32 to vector<32x256xf32>
    %35 = arith.mulf %34, %33 : vector<32x256xf32>
    %36 = arith.mulf %27, %35 : vector<32x256xf32>
    %c0_23 = arith.constant 0 : index
    %c0_24 = arith.constant 0 : index
    %c0_25 = arith.constant 0 : index
    %37 = vector.load %arg5[%c0_23, %c0_24, %c0_25] : memref<3x64x32xf32, #tpu.memory_space<vmem>>, vector<1x64x32xf32>
    %38 = vector.shape_cast %37 : vector<1x64x32xf32> to vector<64x32xf32>
    %cst_26 = arith.constant dense<0.000000e+00> : vector<64x256xf32>
    %39 = tpu.matmul %38, %36, %cst_26 {dimension_numbers = #tpu.dot_dimension_numbers<[1], [0], [0], [1], [0, 0, 1, 1], [], []>} : vector<64x32xf32>, vector<32x256xf32>, vector<64x256xf32> -> vector<64x256xf32>
    %c0_27 = arith.constant 0 : index
    %c0_28 = arith.constant 0 : index
    %c0_29 = arith.constant 0 : index
    %40 = vector.load %arg6[%c0_27, %c0_28, %c0_29] : memref<4x64x1xf32, #tpu.memory_space<vmem>>, vector<1x64x1xf32>
    %41 = vector.shape_cast %40 : vector<1x64x1xf32> to vector<64x1xf32>
    %42 = vector.broadcast %41 : vector<64x1xf32> to vector<64x256xf32>
    %43 = arith.addf %39, %42 : vector<64x256xf32>
    %44 = vector.extract_strided_slice %43 {offsets = [0, 0], sizes = [32, 256], strides = [1, 1]} : vector<64x256xf32> to vector<32x256xf32>
    %45 = arith.addf %44, %0 : vector<32x256xf32>
    %cst_30 = arith.constant 0.707106769 : f32
    %46 = vector.broadcast %cst_30 : f32 to vector<32x256xf32>
    %47 = arith.mulf %45, %46 : vector<32x256xf32>
    %48 = vector.extract_strided_slice %43 {offsets = [32, 0], sizes = [32, 256], strides = [1, 1]} : vector<64x256xf32> to vector<32x256xf32>
    %49 = arith.addf %1, %48 : vector<32x256xf32>
    %c1_31 = arith.constant 1 : index
    %c0_32 = arith.constant 0 : index
    %c0_33 = arith.constant 0 : index
    %50 = vector.load %arg4[%c1_31, %c0_32, %c0_33] : memref<3x64x256xf32, #tpu.memory_space<vmem>>, vector<1x64x256xf32>
    %51 = vector.shape_cast %50 : vector<1x64x256xf32> to vector<64x256xf32>
    %c2_i32 = arith.constant 2 : i32
    %52 = tpu.dynamic_rotate %47 by %c2_i32 dim 1 : vector<32x256xf32>, i32 -> vector<32x256xf32>
    %c0_34 = arith.constant 0 : index
    %c0_35 = arith.constant 0 : index
    %c0_36 = arith.constant 0 : index
    %53 = vector.load %arg2[%c0_34, %c0_35, %c0_36] : memref<4x1x256xf32, #tpu.memory_space<vmem>>, vector<1x1x256xf32>
    %54 = vector.shape_cast %53 : vector<1x1x256xf32> to vector<1x256xf32>
    %55 = vector.broadcast %54 : vector<1x256xf32> to vector<32x256xf32>
    %56 = arith.mulf %52, %55 : vector<32x256xf32>
    %c3 = arith.constant 3 : index
    %c0_37 = arith.constant 0 : index
    %c0_38 = arith.constant 0 : index
    %57 = vector.load %arg3[%c3, %c0_37, %c0_38] : memref<9x64x32xf32, #tpu.memory_space<vmem>>, vector<1x64x32xf32>
    %58 = vector.shape_cast %57 : vector<1x64x32xf32> to vector<64x32xf32>
    %cst_39 = arith.constant dense<0.000000e+00> : vector<64x256xf32>
    %59 = tpu.matmul %58, %56, %cst_39 {dimension_numbers = #tpu.dot_dimension_numbers<[1], [0], [0], [1], [0, 0, 1, 1], [], []>} : vector<64x32xf32>, vector<32x256xf32>, vector<64x256xf32> -> vector<64x256xf32>
    %60 = arith.addf %51, %59 : vector<64x256xf32>
    %c4 = arith.constant 4 : index
    %c0_40 = arith.constant 0 : index
    %c0_41 = arith.constant 0 : index
    %61 = vector.load %arg3[%c4, %c0_40, %c0_41] : memref<9x64x32xf32, #tpu.memory_space<vmem>>, vector<1x64x32xf32>
    %62 = vector.shape_cast %61 : vector<1x64x32xf32> to vector<64x32xf32>
    %cst_42 = arith.constant dense<0.000000e+00> : vector<64x256xf32>
    %63 = tpu.matmul %62, %47, %cst_42 {dimension_numbers = #tpu.dot_dimension_numbers<[1], [0], [0], [1], [0, 0, 1, 1], [], []>} : vector<64x32xf32>, vector<32x256xf32>, vector<64x256xf32> -> vector<64x256xf32>
    %64 = arith.addf %60, %63 : vector<64x256xf32>
    %c254_i32 = arith.constant 254 : i32
    %65 = tpu.dynamic_rotate %47 by %c254_i32 dim 1 : vector<32x256xf32>, i32 -> vector<32x256xf32>
    %c3_43 = arith.constant 3 : index
    %c0_44 = arith.constant 0 : index
    %c0_45 = arith.constant 0 : index
    %66 = vector.load %arg2[%c3_43, %c0_44, %c0_45] : memref<4x1x256xf32, #tpu.memory_space<vmem>>, vector<1x1x256xf32>
    %67 = vector.shape_cast %66 : vector<1x1x256xf32> to vector<1x256xf32>
    %68 = vector.broadcast %67 : vector<1x256xf32> to vector<32x256xf32>
    %69 = arith.mulf %65, %68 : vector<32x256xf32>
    %c5 = arith.constant 5 : index
    %c0_46 = arith.constant 0 : index
    %c0_47 = arith.constant 0 : index
    %70 = vector.load %arg3[%c5, %c0_46, %c0_47] : memref<9x64x32xf32, #tpu.memory_space<vmem>>, vector<1x64x32xf32>
    %71 = vector.shape_cast %70 : vector<1x64x32xf32> to vector<64x32xf32>
    %cst_48 = arith.constant dense<0.000000e+00> : vector<64x256xf32>
    %72 = tpu.matmul %71, %69, %cst_48 {dimension_numbers = #tpu.dot_dimension_numbers<[1], [0], [0], [1], [0, 0, 1, 1], [], []>} : vector<64x32xf32>, vector<32x256xf32>, vector<64x256xf32> -> vector<64x256xf32>
    %73 = arith.addf %64, %72 : vector<64x256xf32>
    %74 = vector.extract_strided_slice %73 {offsets = [0, 0], sizes = [32, 256], strides = [1, 1]} : vector<64x256xf32> to vector<32x256xf32>
    %75 = math.tanh %74 : vector<32x256xf32>
    %76 = vector.extract_strided_slice %73 {offsets = [32, 0], sizes = [32, 256], strides = [1, 1]} : vector<64x256xf32> to vector<32x256xf32>
    %cst_49 = arith.constant 5.000000e-01 : f32
    %77 = vector.broadcast %cst_49 : f32 to vector<32x256xf32>
    %78 = arith.mulf %77, %76 : vector<32x256xf32>
    %79 = math.tanh %78 : vector<32x256xf32>
    %cst_50 = arith.constant 1.000000e+00 : f32
    %80 = vector.broadcast %cst_50 : f32 to vector<32x256xf32>
    %81 = arith.addf %79, %80 : vector<32x256xf32>
    %cst_51 = arith.constant 5.000000e-01 : f32
    %82 = vector.broadcast %cst_51 : f32 to vector<32x256xf32>
    %83 = arith.mulf %82, %81 : vector<32x256xf32>
    %84 = arith.mulf %75, %83 : vector<32x256xf32>
    %c1_52 = arith.constant 1 : index
    %c0_53 = arith.constant 0 : index
    %c0_54 = arith.constant 0 : index
    %85 = vector.load %arg5[%c1_52, %c0_53, %c0_54] : memref<3x64x32xf32, #tpu.memory_space<vmem>>, vector<1x64x32xf32>
    %86 = vector.shape_cast %85 : vector<1x64x32xf32> to vector<64x32xf32>
    %cst_55 = arith.constant dense<0.000000e+00> : vector<64x256xf32>
    %87 = tpu.matmul %86, %84, %cst_55 {dimension_numbers = #tpu.dot_dimension_numbers<[1], [0], [0], [1], [0, 0, 1, 1], [], []>} : vector<64x32xf32>, vector<32x256xf32>, vector<64x256xf32> -> vector<64x256xf32>
    %c1_56 = arith.constant 1 : index
    %c0_57 = arith.constant 0 : index
    %c0_58 = arith.constant 0 : index
    %88 = vector.load %arg6[%c1_56, %c0_57, %c0_58] : memref<4x64x1xf32, #tpu.memory_space<vmem>>, vector<1x64x1xf32>
    %89 = vector.shape_cast %88 : vector<1x64x1xf32> to vector<64x1xf32>
    %90 = vector.broadcast %89 : vector<64x1xf32> to vector<64x256xf32>
    %91 = arith.addf %87, %90 : vector<64x256xf32>
    %92 = vector.extract_strided_slice %91 {offsets = [0, 0], sizes = [32, 256], strides = [1, 1]} : vector<64x256xf32> to vector<32x256xf32>
    %93 = arith.addf %92, %47 : vector<32x256xf32>
    %cst_59 = arith.constant 0.707106769 : f32
    %94 = vector.broadcast %cst_59 : f32 to vector<32x256xf32>
    %95 = arith.mulf %93, %94 : vector<32x256xf32>
    %96 = vector.extract_strided_slice %91 {offsets = [32, 0], sizes = [32, 256], strides = [1, 1]} : vector<64x256xf32> to vector<32x256xf32>
    %97 = arith.addf %49, %96 : vector<32x256xf32>
    %c2_60 = arith.constant 2 : index
    %c0_61 = arith.constant 0 : index
    %c0_62 = arith.constant 0 : index
    %98 = vector.load %arg4[%c2_60, %c0_61, %c0_62] : memref<3x64x256xf32, #tpu.memory_space<vmem>>, vector<1x64x256xf32>
    %99 = vector.shape_cast %98 : vector<1x64x256xf32> to vector<64x256xf32>
    %c1_i32_63 = arith.constant 1 : i32
    %100 = tpu.dynamic_rotate %95 by %c1_i32_63 dim 1 : vector<32x256xf32>, i32 -> vector<32x256xf32>
    %c1_64 = arith.constant 1 : index
    %c0_65 = arith.constant 0 : index
    %c0_66 = arith.constant 0 : index
    %101 = vector.load %arg2[%c1_64, %c0_65, %c0_66] : memref<4x1x256xf32, #tpu.memory_space<vmem>>, vector<1x1x256xf32>
    %102 = vector.shape_cast %101 : vector<1x1x256xf32> to vector<1x256xf32>
    %103 = vector.broadcast %102 : vector<1x256xf32> to vector<32x256xf32>
    %104 = arith.mulf %100, %103 : vector<32x256xf32>
    %c6 = arith.constant 6 : index
    %c0_67 = arith.constant 0 : index
    %c0_68 = arith.constant 0 : index
    %105 = vector.load %arg3[%c6, %c0_67, %c0_68] : memref<9x64x32xf32, #tpu.memory_space<vmem>>, vector<1x64x32xf32>
    %106 = vector.shape_cast %105 : vector<1x64x32xf32> to vector<64x32xf32>
    %cst_69 = arith.constant dense<0.000000e+00> : vector<64x256xf32>
    %107 = tpu.matmul %106, %104, %cst_69 {dimension_numbers = #tpu.dot_dimension_numbers<[1], [0], [0], [1], [0, 0, 1, 1], [], []>} : vector<64x32xf32>, vector<32x256xf32>, vector<64x256xf32> -> vector<64x256xf32>
    %108 = arith.addf %99, %107 : vector<64x256xf32>
    %c7 = arith.constant 7 : index
    %c0_70 = arith.constant 0 : index
    %c0_71 = arith.constant 0 : index
    %109 = vector.load %arg3[%c7, %c0_70, %c0_71] : memref<9x64x32xf32, #tpu.memory_space<vmem>>, vector<1x64x32xf32>
    %110 = vector.shape_cast %109 : vector<1x64x32xf32> to vector<64x32xf32>
    %cst_72 = arith.constant dense<0.000000e+00> : vector<64x256xf32>
    %111 = tpu.matmul %110, %95, %cst_72 {dimension_numbers = #tpu.dot_dimension_numbers<[1], [0], [0], [1], [0, 0, 1, 1], [], []>} : vector<64x32xf32>, vector<32x256xf32>, vector<64x256xf32> -> vector<64x256xf32>
    %112 = arith.addf %108, %111 : vector<64x256xf32>
    %c255_i32_73 = arith.constant 255 : i32
    %113 = tpu.dynamic_rotate %95 by %c255_i32_73 dim 1 : vector<32x256xf32>, i32 -> vector<32x256xf32>
    %c2_74 = arith.constant 2 : index
    %c0_75 = arith.constant 0 : index
    %c0_76 = arith.constant 0 : index
    %114 = vector.load %arg2[%c2_74, %c0_75, %c0_76] : memref<4x1x256xf32, #tpu.memory_space<vmem>>, vector<1x1x256xf32>
    %115 = vector.shape_cast %114 : vector<1x1x256xf32> to vector<1x256xf32>
    %116 = vector.broadcast %115 : vector<1x256xf32> to vector<32x256xf32>
    %117 = arith.mulf %113, %116 : vector<32x256xf32>
    %c8 = arith.constant 8 : index
    %c0_77 = arith.constant 0 : index
    %c0_78 = arith.constant 0 : index
    %118 = vector.load %arg3[%c8, %c0_77, %c0_78] : memref<9x64x32xf32, #tpu.memory_space<vmem>>, vector<1x64x32xf32>
    %119 = vector.shape_cast %118 : vector<1x64x32xf32> to vector<64x32xf32>
    %cst_79 = arith.constant dense<0.000000e+00> : vector<64x256xf32>
    %120 = tpu.matmul %119, %117, %cst_79 {dimension_numbers = #tpu.dot_dimension_numbers<[1], [0], [0], [1], [0, 0, 1, 1], [], []>} : vector<64x32xf32>, vector<32x256xf32>, vector<64x256xf32> -> vector<64x256xf32>
    %121 = arith.addf %112, %120 : vector<64x256xf32>
    %122 = vector.extract_strided_slice %121 {offsets = [0, 0], sizes = [32, 256], strides = [1, 1]} : vector<64x256xf32> to vector<32x256xf32>
    %123 = math.tanh %122 : vector<32x256xf32>
    %124 = vector.extract_strided_slice %121 {offsets = [32, 0], sizes = [32, 256], strides = [1, 1]} : vector<64x256xf32> to vector<32x256xf32>
    %cst_80 = arith.constant 5.000000e-01 : f32
    %125 = vector.broadcast %cst_80 : f32 to vector<32x256xf32>
    %126 = arith.mulf %125, %124 : vector<32x256xf32>
    %127 = math.tanh %126 : vector<32x256xf32>
    %cst_81 = arith.constant 1.000000e+00 : f32
    %128 = vector.broadcast %cst_81 : f32 to vector<32x256xf32>
    %129 = arith.addf %127, %128 : vector<32x256xf32>
    %cst_82 = arith.constant 5.000000e-01 : f32
    %130 = vector.broadcast %cst_82 : f32 to vector<32x256xf32>
    %131 = arith.mulf %130, %129 : vector<32x256xf32>
    %132 = arith.mulf %123, %131 : vector<32x256xf32>
    %c2_83 = arith.constant 2 : index
    %c0_84 = arith.constant 0 : index
    %c0_85 = arith.constant 0 : index
    %133 = vector.load %arg5[%c2_83, %c0_84, %c0_85] : memref<3x64x32xf32, #tpu.memory_space<vmem>>, vector<1x64x32xf32>
    %134 = vector.shape_cast %133 : vector<1x64x32xf32> to vector<64x32xf32>
    %cst_86 = arith.constant dense<0.000000e+00> : vector<64x256xf32>
    %135 = tpu.matmul %134, %132, %cst_86 {dimension_numbers = #tpu.dot_dimension_numbers<[1], [0], [0], [1], [0, 0, 1, 1], [], []>} : vector<64x32xf32>, vector<32x256xf32>, vector<64x256xf32> -> vector<64x256xf32>
    %c2_87 = arith.constant 2 : index
    %c0_88 = arith.constant 0 : index
    %c0_89 = arith.constant 0 : index
    %136 = vector.load %arg6[%c2_87, %c0_88, %c0_89] : memref<4x64x1xf32, #tpu.memory_space<vmem>>, vector<1x64x1xf32>
    %137 = vector.shape_cast %136 : vector<1x64x1xf32> to vector<64x1xf32>
    %138 = vector.broadcast %137 : vector<64x1xf32> to vector<64x256xf32>
    %139 = arith.addf %135, %138 : vector<64x256xf32>
    %140 = vector.extract_strided_slice %139 {offsets = [32, 0], sizes = [32, 256], strides = [1, 1]} : vector<64x256xf32> to vector<32x256xf32>
    %141 = arith.addf %97, %140 : vector<32x256xf32>
    %cst_90 = arith.constant 0.577350259 : f32
    %142 = vector.broadcast %cst_90 : f32 to vector<32x256xf32>
    %143 = arith.mulf %141, %142 : vector<32x256xf32>
    %c0_91 = arith.constant 0 : index
    %c0_92 = arith.constant 0 : index
    %144 = vector.load %arg7[%c0_91, %c0_92] : memref<33x32xf32, #tpu.memory_space<vmem>>, vector<33x32xf32>
    %c3_93 = arith.constant 3 : index
    %c0_94 = arith.constant 0 : index
    %c0_95 = arith.constant 0 : index
    %145 = vector.load %arg6[%c3_93, %c0_94, %c0_95] : memref<4x64x1xf32, #tpu.memory_space<vmem>>, vector<1x64x1xf32>
    %146 = vector.shape_cast %145 : vector<1x64x1xf32> to vector<64x1xf32>
    %147 = vector.extract_strided_slice %146 {offsets = [0, 0], sizes = [32, 1], strides = [1, 1]} : vector<64x1xf32> to vector<32x1xf32>
    %148 = vector.extract_strided_slice %144 {offsets = [0, 0], sizes = [32, 32], strides = [1, 1]} : vector<33x32xf32> to vector<32x32xf32>
    %cst_96 = arith.constant dense<0.000000e+00> : vector<32x256xf32>
    %149 = tpu.matmul %148, %143, %cst_96 {dimension_numbers = #tpu.dot_dimension_numbers<[1], [0], [0], [1], [0, 0, 1, 1], [], []>} : vector<32x32xf32>, vector<32x256xf32>, vector<32x256xf32> -> vector<32x256xf32>
    %150 = vector.broadcast %147 : vector<32x1xf32> to vector<32x256xf32>
    %151 = arith.addf %149, %150 : vector<32x256xf32>
    %cst_97 = arith.constant 5.000000e-01 : f32
    %152 = vector.broadcast %cst_97 : f32 to vector<32x256xf32>
    %153 = arith.mulf %152, %151 : vector<32x256xf32>
    %cst_98 = arith.constant 4.471500e-02 : f32
    %154 = vector.broadcast %cst_98 : f32 to vector<32x256xf32>
    %155 = arith.mulf %154, %151 : vector<32x256xf32>
    %156 = arith.mulf %155, %151 : vector<32x256xf32>
    %157 = arith.mulf %156, %151 : vector<32x256xf32>
    %158 = arith.addf %151, %157 : vector<32x256xf32>
    %cst_99 = arith.constant 0.797884583 : f32
    %159 = vector.broadcast %cst_99 : f32 to vector<32x256xf32>
    %160 = arith.mulf %159, %158 : vector<32x256xf32>
    %161 = math.tanh %160 : vector<32x256xf32>
    %cst_100 = arith.constant 1.000000e+00 : f32
    %162 = vector.broadcast %cst_100 : f32 to vector<32x256xf32>
    %163 = arith.addf %162, %161 : vector<32x256xf32>
    %164 = arith.mulf %153, %163 : vector<32x256xf32>
    %165 = vector.extract_strided_slice %144 {offsets = [32, 0], sizes = [1, 32], strides = [1, 1]} : vector<33x32xf32> to vector<1x32xf32>
    %cst_101 = arith.constant dense<0.000000e+00> : vector<1x256xf32>
    %166 = tpu.matmul %165, %164, %cst_101 {dimension_numbers = #tpu.dot_dimension_numbers<[1], [0], [0], [1], [0, 0, 1, 1], [], []>} : vector<1x32xf32>, vector<32x256xf32>, vector<1x256xf32> -> vector<1x256xf32>
    %c0_102 = arith.constant 0 : index
    %c0_103 = arith.constant 0 : index
    %167 = vector.load %arg8[%c0_102, %c0_103] : memref<1x1xf32, #tpu.memory_space<vmem>>, vector<1x1xf32>
    %168 = vector.broadcast %167 : vector<1x1xf32> to vector<1x256xf32>
    %169 = arith.addf %166, %168 : vector<1x256xf32>
    %c0_104 = arith.constant 0 : index
    %c0_105 = arith.constant 0 : index
    %170 = vector.load %arg9[%c0_104, %c0_105] : memref<1x256xf32, #tpu.memory_space<vmem>>, vector<1x256xf32>
    tpu.vector_store %arg9[%c0_104, %c0_105], %169 {strides = array<i32>} : memref<1x256xf32, #tpu.memory_space<vmem>>, vector<1x256xf32>,
    return
  }
  func.func @transform_0(%arg0: i32) -> (i32, i32) {
    %c0_i32 = arith.constant 0 : i32
    %c0_i32_0 = arith.constant 0 : i32
    %c0_i32_1 = arith.constant 0 : i32
    return %c0_i32, %c0_i32_0 : i32, i32
  }
  func.func @transform_1(%arg0: i32) -> (i32, i32, i32) {
    %c0_i32 = arith.constant 0 : i32
    %c0_i32_0 = arith.constant 0 : i32
    %c0_i32_1 = arith.constant 0 : i32
    %c0_i32_2 = arith.constant 0 : i32
    return %c0_i32, %c0_i32_0, %c0_i32_1 : i32, i32, i32
  }
  func.func @transform_2(%arg0: i32) -> (i32, i32, i32) {
    %c0_i32 = arith.constant 0 : i32
    %c0_i32_0 = arith.constant 0 : i32
    %c0_i32_1 = arith.constant 0 : i32
    %c0_i32_2 = arith.constant 0 : i32
    return %c0_i32, %c0_i32_0, %c0_i32_1 : i32, i32, i32
  }
  func.func @transform_3(%arg0: i32) -> (i32, i32, i32) {
    %c0_i32 = arith.constant 0 : i32
    %c0_i32_0 = arith.constant 0 : i32
    %c0_i32_1 = arith.constant 0 : i32
    %c0_i32_2 = arith.constant 0 : i32
    return %c0_i32, %c0_i32_0, %c0_i32_1 : i32, i32, i32
  }
  func.func @transform_4(%arg0: i32) -> (i32, i32, i32) {
    %c0_i32 = arith.constant 0 : i32
    %c0_i32_0 = arith.constant 0 : i32
    %c0_i32_1 = arith.constant 0 : i32
    %c0_i32_2 = arith.constant 0 : i32
    return %c0_i32, %c0_i32_0, %c0_i32_1 : i32, i32, i32
  }
  func.func @transform_5(%arg0: i32) -> (i32, i32, i32) {
    %c0_i32 = arith.constant 0 : i32
    %c0_i32_0 = arith.constant 0 : i32
    %c0_i32_1 = arith.constant 0 : i32
    %c0_i32_2 = arith.constant 0 : i32
    return %c0_i32, %c0_i32_0, %c0_i32_1 : i32, i32, i32
  }
  func.func @transform_6(%arg0: i32) -> (i32, i32) {
    %c0_i32 = arith.constant 0 : i32
    %c0_i32_0 = arith.constant 0 : i32
    %c0_i32_1 = arith.constant 0 : i32
    return %c0_i32, %c0_i32_0 : i32, i32
  }
  func.func @transform_7(%arg0: i32) -> (i32, i32) {
    %c0_i32 = arith.constant 0 : i32
    %c0_i32_0 = arith.constant 0 : i32
    %c0_i32_1 = arith.constant 0 : i32
    return %c0_i32, %c0_i32_0 : i32, i32
  }
  func.func @transform_8(%arg0: i32) -> (i32, i32) {
    %c0_i32 = arith.constant 0 : i32
    %c0_i32_0 = arith.constant 0 : i32
    %c0_i32_1 = arith.constant 0 : i32
    return %c0_i32, %c0_i32_0 : i32, i32
  }
}

</mosaic_0001>

<bundles_post_ra>
// kernel: network_forward.1
= control target key start
LH: loop header
LB: loop body
LE: loop exit
PB: predicated region body
PF: predicated region fallthrough
CT: control target
= control target key end

     0   :  { %s4814_s0 = inlined_call_operand.vmem [shape: f32[32,256], index: 0, kind: input, shape index: {}]   ;;  %s4815_s1 = inlined_call_operand.vmem [shape: f32[4,1,256], index: 1, kind: input, shape index: {}]   ;;  %s4816_s2 = inlined_call_operand.vmem [shape: f32[9,64,32], index: 2, kind: input, shape index: {}]   ;;  %s4817_s3 = inlined_call_operand.vmem [shape: f32[3,64,256], index: 3, kind: input, shape index: {}]   ;;  %s4818_s4 = inlined_call_operand.vmem [shape: f32[3,64,32], index: 4, kind: input, shape index: {}]   ;;  %s4819_s5 = inlined_call_operand.vmem [shape: f32[4,64,1], index: 5, kind: input, shape index: {}]   ;;  %s4820_s6 = inlined_call_operand.vmem [shape: f32[33,32], index: 6, kind: input, shape index: {}]   ;;  %s4821_s7 = inlined_call_operand.<no memory space> [shape: f32[1,1], index: 7, kind: input, shape index: {}]   ;;  %s4822_s8 = inlined_call_operand.hbm [shape: f32[1,256], index: 8, kind: output, shape index: {}]  }
   0x1   :  { %v13_v0 = vstv %s4821_s7 }
   0x2   :  { %14 = vst [vmem:[#allocation2] sm:$0x1] %v13_v0 }
   0x3   :  { %v3637_v1 = vld [vmem:[%s4814_s0 + $0x8] sm:$0xff]  ;;  %v3642_v2 = vld [vmem:[%s4814_s0] sm:$0xff]  ;;  %s3578_s11 = smov 1   ;;  %v3651_v3 = vld [vmem:[%s4814_s0 + $0x18] sm:$0xff] }
   0x4   :  { %64 = vrot.lane.b32.xlu1 %v3637_v1, %s3578_s11  ;;  %56 = vrot.lane.b32.xlu0 %v3642_v2, %s3578_s11  ;;  %v3656_v4 = vld [vmem:[%s4814_s0 + $0x10] sm:$0xff] }
   0x5   :  { %15 = vsyncpa [#allocation4], 0  ;;  %v3665_v5 = vld [vmem:[%s4814_s0 + $0x30] sm:$0xff]  ;;  %v3670_v6 = vld [vmem:[%s4814_s0 + $0x20] sm:$0xff]  ;;  %v3579_v7 = vmov 0.0   ;;  %s3580_s23 = smov 127   ;;  %v72_v10 = vlaneseq  ;;  %v3144_v47 = vpack.c.bf16 %v3651_v3, %v3637_v1  ;;  %v3146_v52 = vpack.c.bf16 %v3656_v4, %v3642_v2 }
   0x6   :  { %201 = vmatprep.mubr.f32.mxu0 %v3579_v7  ;;  %828 = vmatprep.mubr.f32.mxu1 %v3579_v7  ;;  %v3681_v8 = vld [vmem:[%s4814_s0 + $0x38] sm:$0xff]  ;;  %v3686_v9 = vld [vmem:[%s4814_s0 + $0x28] sm:$0xff]  ;;  %v2900_v15 = vld [vmem:[%s4815_s1 + $0x2] sm:$0x3]  ;;  %vm112_vm2 = vcmask 261120   ;;  %v3150_v61 = vpack.c.bf16 %v3665_v5, %v3670_v6  ;;  %s3582_s17 = smov 2  }
   0x7   :  { %v3709_v11 = vshrl.u32 %v72_v10, 7  ;;  %v3712_v12 = vand.u32 127, %v72_v10  ;;  %v2925_v44 = vld [vmem:[%s4815_s1 + $0x4] sm:$0x3]  ;;  %v3148_v53 = vpack.c.bf16 %v3681_v8, %v3686_v9  ;;  %v105_v60 = vld [vmem:[%s4816_s2 + $0x8] sm:$0xff]  ;;  %v106_v63 = vld [vmem:[%s4816_s2 + $0x10] sm:$0xff] }
   0x8   :  { %66 = vrot.lane.b32.xlu1 %v3651_v3, %s3578_s11  ;;  %58 = vrot.lane.b32.xlu0 %v3656_v4, %s3578_s11  ;;  %v104_v51 = vld [vmem:[%s4816_s2] sm:$0xff]  ;;  %v107_v0 = vld [vmem:[%s4816_s2 + $0x18] sm:$0xff]  ;;  %s3583_s22 = smov 126   ;;  %vm2883_vm5 = vcmp.lt.s32.totalorder %v72_v10, 256 }
   0x9   :  { %v3715_v13 = vsub.s32 0, %v3709_v11  ;;  %v3718_v14 = vsub.s32 1, %v3709_v11  ;;  %vm74_vm0 = vcmp.lt.s32.totalorder %v3712_v12, 1  ;;  %vm444_vm1 = vcmp.lt.s32.totalorder %v3712_v12, 127 }
   0xa   :  { %vm934_vm3 = vcmp.lt.s32.totalorder %v3712_v12, 2  ;;  %vm1303_vm4 = vcmp.lt.s32.totalorder %v3712_v12, 126 }
   0xb   :  { %v3725_v18 = vrot.slane %v2900_v15, %v3715_v13  ;;  %v3728_v19 = vrot.slane %v2900_v15, %v3718_v14  ;;  %v3761_v50 = vrot.slane %v2925_v44, %v3718_v14  ;;  %v108_v15 = vld [vmem:[%s4816_s2 + $0x20] sm:$0xff] }
   0xc   :  { %62 = vrot.lane.b32.xlu1 %v3665_v5, %s3578_s11  ;;  %60 = vrot.lane.b32.xlu0 %v3670_v6, %s3578_s11 }
  0x10   :  { %70 = vrot.lane.b32.xlu1 %v3681_v8, %s3578_s11  ;;  %68 = vrot.lane.b32.xlu0 %v3686_v9, %s3578_s11 }
  0x14   :  { %430 = vrot.lane.b32.xlu1 %v3656_v4, %s3580_s23  ;;  %428 = vrot.lane.b32.xlu0 %v3642_v2, %s3580_s23 }
  0x18   :  { %438 = vrot.lane.b32.xlu1 %v3651_v3, %s3580_s23  ;;  %436 = vrot.lane.b32.xlu0 %v3637_v1, %s3580_s23 }
  0x1c   :  { %434 = vrot.lane.b32.xlu1 %v3665_v5, %s3580_s23  ;;  %432 = vrot.lane.b32.xlu0 %v3670_v6, %s3580_s23 }
  0x20   :  { %442 = vrot.lane.b32.xlu1 %v3681_v8, %s3580_s23  ;;  %440 = vrot.lane.b32.xlu0 %v3686_v9, %s3580_s23 }
  0x76   :  { %v65_v16 = vpop.permute.xlu1 %64  ;;  %v57_v17 = vpop.permute.xlu0 %56 }
  0x77   :  { %v75_v20 = vsel %vm74_vm0, %v57_v17, %v65_v16  ;;  %v79_v21 = vsel %vm74_vm0, %v65_v16, %v57_v17 }
  0x78   :  { %v96_v26 = vmul.f32 %v3725_v18, %v79_v21  ;;  %v97_v28 = vmul.f32 %v3728_v19, %v75_v20  ;;  %v109_v20 = vld [vmem:[%s4816_s2 + $0x28] sm:$0xff] }
  0x7a   :  { %v67_v22 = vpop.permute.xlu1 %66  ;;  %v59_v23 = vpop.permute.xlu0 %58 }
  0x7b   :  { %v76_v24 = vsel %vm74_vm0, %v59_v23, %v67_v22  ;;  %v80_v25 = vsel %vm74_vm0, %v67_v22, %v59_v23  ;;  %v110_v23 = vld [vmem:[%s4816_s2 + $0x30] sm:$0xff] }
  0x7c   :  { %v98_v27 = vmul.f32 %v3725_v18, %v80_v25  ;;  %v99_v29 = vmul.f32 %v3728_v19, %v76_v24  ;;  %v3809_v24 = vrot.slane %v2925_v44, %v3715_v13  ;;  %v2912_v44 = vld [vmem:[%s4816_s2 + $0x58] sm:$0xff] }
  0x7e   :  { %v63_v30 = vpop.permute.xlu1 %62  ;;  %v61_v31 = vpop.permute.xlu0 %60  ;;  %v3136_v32 = vpack.c.bf16 %v99_v29, %v97_v28  ;;  %v3138_v33 = vpack.c.bf16 %v98_v27, %v96_v26  ;;  %v111_v29 = vld [vmem:[%s4816_s2 + $0x38] sm:$0xff] }
  0x80   :  { %3137 = vmatprep.subr.bf16.mxu0 %v3136_v32 }
  0x81   :  { %3139 = vmatpush1.bf16.msra.mxu0 %v3138_v33 }
  0x82   :  { %v71_v34 = vpop.permute.xlu1 %70  ;;  %v69_v35 = vpop.permute.xlu0 %68 }
  0x83   :  { %v78_v36 = vsel %vm74_vm0, %v63_v30, %v71_v34  ;;  %v82_v37 = vsel %vm74_vm0, %v71_v34, %v63_v30  ;;  %v77_v38 = vsel %vm74_vm0, %v61_v31, %v69_v35  ;;  %v81_v39 = vsel %vm74_vm0, %v69_v35, %v61_v31 }
  0x84   :  { %v102_v40 = vmul.f32 %v3725_v18, %v82_v37  ;;  %v103_v41 = vmul.f32 %v3728_v19, %v78_v36  ;;  %v100_v42 = vmul.f32 %v3725_v18, %v81_v39  ;;  %v101_v43 = vmul.f32 %v3728_v19, %v77_v38  ;;  %v2909_v36 = vld [vmem:[%s4816_s2 + $0x40] sm:$0xff] }
  0x86   :  { %v3140_v45 = vpack.c.bf16 %v103_v41, %v101_v43  ;;  %v3142_v46 = vpack.c.bf16 %v102_v40, %v100_v42  ;;  %v431_v48 = vpop.permute.xlu1 %430  ;;  %v429_v49 = vpop.permute.xlu0 %428  ;;  %v2910_v41 = vld [vmem:[%s4816_s2 + $0x48] sm:$0xff]  ;;  %v2911_v43 = vld [vmem:[%s4816_s2 + $0x50] sm:$0xff] }
  0x88   :  { %3141 = vmatprep.subr.bf16.mxu0 %v3140_v45  ;;  %v2913_v45 = vld [vmem:[%s4816_s2 + $0x60] sm:$0xff] }
  0x89   :  { %3143 = vmatpush1.bf16.msra.mxu0 %v3142_v46  ;;  %v2914_v46 = vld [vmem:[%s4816_s2 + $0x68] sm:$0xff] }
  0x8a   :  { %3145 = vmatprep.subr.bf16.mxu0 %v3144_v47  ;;  %v439_v54 = vpop.permute.xlu1 %438  ;;  %v437_v55 = vpop.permute.xlu0 %436  ;;  %v2915_v47 = vld [vmem:[%s4816_s2 + $0x70] sm:$0xff] }
  0x8b   :  { %v450_v56 = vsel %vm444_vm1, %v439_v54, %v431_v48  ;;  %v449_v57 = vsel %vm444_vm1, %v437_v55, %v429_v49  ;;  %v446_v25 = vsel %vm444_vm1, %v431_v48, %v439_v54  ;;  %v445_v26 = vsel %vm444_vm1, %v429_v49, %v437_v55  ;;  %v2916_v48 = vld [vmem:[%s4816_s2 + $0x78] sm:$0xff]  ;;  %v2926_v49 = vld [vmem:[%s4816_s2 + $0x80] sm:$0xff]  ;;  %v2931_v55 = vld [vmem:[%s4816_s2 + $0xa8] sm:$0xff] }
  0x8c   :  { %2901 = vmatmul.mubr.msk.f32.vlgmr.msra.gmra.mrb[0].mxu0 %vm112_vm2, %v104_v51  ;;  %v469_v58 = vmul.f32 %v3761_v50, %v450_v56  ;;  %v467_v59 = vmul.f32 %v3761_v50, %v449_v57  ;;  %v468_v30 = vmul.f32 %v3809_v24, %v446_v25  ;;  %v466_v31 = vmul.f32 %v3809_v24, %v445_v26  ;;  %v2927_v51 = vld [vmem:[%s4816_s2 + $0x88] sm:$0xff]  ;;  %v2930_v54 = vld [vmem:[%s4816_s2 + $0xa0] sm:$0xff]  ;;  %v2932_v56 = vld [vmem:[%s4816_s2 + $0xb0] sm:$0xff] }
  0x8d   :  { %207 = vmatprep.mubr.f32.mxu0 %v3579_v7  ;;  %3147 = vmatpush1.bf16.msra.mxu0 %v3146_v52  ;;  %v2928_v52 = vld [vmem:[%s4816_s2 + $0x90] sm:$0xff]  ;;  %v2933_v57 = vld [vmem:[%s4816_s2 + $0xb8] sm:$0xff]  ;;  %v49_v25 = vld [vmem:[%s4817_s3 + $0x48] sm:$0xff] }
  0x8e   :  { %3149 = vmatprep.subr.bf16.mxu0 %v3148_v53  ;;  %v3152_v62 = vpack.c.bf16 %v469_v58, %v467_v59  ;;  %v435_v16 = vpop.permute.xlu1 %434  ;;  %v433_v17 = vpop.permute.xlu0 %432  ;;  %v3154_v37 = vpack.c.bf16 %v468_v30, %v466_v31  ;;  %v2929_v53 = vld [vmem:[%s4816_s2 + $0x98] sm:$0xff]  ;;  %v693_v58 = vld [vmem:[%s4819_s5 + $0x8] sm:$0xff]  ;;  %v692_v59 = vld [vmem:[%s4819_s5] sm:$0xff] }
  0x8f   :  { %v40_v26 = vld [vmem:[%s4817_s3] sm:$0xff] }
  0x90   :  { %2902 = vmatmul.mubr.msk.f32.gmra.mrb[2].mxu0 %vm112_vm2, %v105_v60  ;;  %v3581_v60 = vmov 0  }
  0x91   :  { %213 = vmatprep.mubr.f32.mxu0 %v3579_v7  ;;  %3151 = vmatpush1.bf16.msra.mxu0 %v3150_v61  ;;  %v694_v61 = vld [vmem:[%s4819_s5 + $0x10] sm:$0xff] }
  0x92   :  { %3153 = vmatprep.subr.bf16.mxu0 %v3152_v62  ;;  %v443_v21 = vpop.permute.xlu1 %442  ;;  %v441_v22 = vpop.permute.xlu0 %440  ;;  %3441 = vset.pattern.permute.xlu1 %v3581_v60  ;;  %v695_v62 = vld [vmem:[%s4819_s5 + $0x18] sm:$0xff] }
  0x93   :  { %v452_v27 = vsel %vm444_vm1, %v443_v21, %v435_v16  ;;  %v451_v28 = vsel %vm444_vm1, %v441_v22, %v433_v17  ;;  %v448_v32 = vsel %vm444_vm1, %v435_v16, %v443_v21  ;;  %v447_v34 = vsel %vm444_vm1, %v433_v17, %v441_v22  ;;  %3440 = vset.pattern.permute.xlu0 %v3581_v60  ;;  %v55_v60 = vld [vmem:[%s4817_s3 + $0x78] sm:$0xff] }
  0x94   :  { %2903 = vmatmul.mubr.msk.f32.gmra.mrb[4].mxu0 %vm112_vm2, %v106_v63  ;;  %v473_v33 = vmul.f32 %v3761_v50, %v452_v27  ;;  %v471_v35 = vmul.f32 %v3761_v50, %v451_v28  ;;  %v472_v38 = vmul.f32 %v3809_v24, %v448_v32  ;;  %v470_v39 = vmul.f32 %v3809_v24, %v447_v34  ;;  %v41_v28 = vld [vmem:[%s4817_s3 + $0x8] sm:$0xff]  ;;  %v50_v32 = vld [vmem:[%s4817_s3 + $0x50] sm:$0xff] }
  0x95   :  { %219 = vmatprep.mubr.f32.mxu0 %v3579_v7  ;;  %707 = vperm.xlu1 %3441, %v693_v58  }
  0x96   :  { %v3156_v40 = vpack.c.bf16 %v473_v33, %v471_v35  ;;  %v3158_v42 = vpack.c.bf16 %v472_v38, %v470_v39  ;;  %702 = vperm.xlu0 %3440, %v692_v59   ;;  %v51_v35 = vld [vmem:[%s4817_s3 + $0x58] sm:$0xff] }
  0x98   :  { %2904 = vmatmul.mubr.msk.f32.gmra.mrb[6].mxu0 %vm112_vm2, %v107_v0 }
  0x99   :  { %225 = vmatprep.mubr.f32.mxu0 %v3579_v7  ;;  %712 = vperm.xlu1 %3441, %v694_v61  }
  0x9a   :  { %717 = vperm.xlu0 %3440, %v695_v62  }
  0x9c   :  { %2905 = vmatmul.mubr.msk.f32.gmra.mrb[8].mxu0 %vm112_vm2, %v108_v15 }
  0x9d   :  { %231 = vmatprep.mubr.f32.mxu0 %v3579_v7 }
  0xa0   :  { %2906 = vmatmul.mubr.msk.f32.gmra.mrb[10].mxu0 %vm112_vm2, %v109_v20 }
  0xa1   :  { %237 = vmatprep.mubr.f32.mxu0 %v3579_v7 }
  0xa4   :  { %2907 = vmatmul.mubr.msk.f32.gmra.mrb[12].mxu0 %vm112_vm2, %v110_v23  ;;  %v48_v23 = vld [vmem:[%s4817_s3 + $0x40] sm:$0xff] }
  0xa5   :  { %243 = vmatprep.mubr.f32.mxu0 %v3579_v7 }
  0xa8   :  { %2908 = vmatmul.mubr.msk.f32.gmra.mrb[14].mxu0 %vm112_vm2, %v111_v29 }
  0xa9   :  { %363 = vmatprep.mubr.f32.mxu0 %v3579_v7 }
  0xac   :  { %2917 = vmatmul.mubr.msk.f32.vlgmr.msra.gmra.mrb[0].mxu0 %vm112_vm2, %v2909_v36 }
  0xad   :  { %369 = vmatprep.mubr.f32.mxu0 %v3579_v7  ;;  %3155 = vmatpush1.bf16.msra.mxu0 %v3154_v37  ;;  %v42_v37 = vld [vmem:[%s4817_s3 + $0x10] sm:$0xff] }
  0xae   :  { %3157 = vmatprep.subr.bf16.mxu0 %v3156_v40  ;;  %v43_v40 = vld [vmem:[%s4817_s3 + $0x18] sm:$0xff] }
  0xb0   :  { %2918 = vmatmul.mubr.msk.f32.gmra.mrb[2].mxu0 %vm112_vm2, %v2910_v41 }
  0xb1   :  { %375 = vmatprep.mubr.f32.mxu0 %v3579_v7  ;;  %3159 = vmatpush1.bf16.msra.mxu0 %v3158_v42 }
  0xb4   :  { %2919 = vmatmul.mubr.msk.f32.gmra.mrb[4].mxu0 %vm112_vm2, %v2911_v43 }
  0xb5   :  { %381 = vmatprep.mubr.f32.mxu0 %v3579_v7 }
  0xb8   :  { %2920 = vmatmul.mubr.msk.f32.gmra.mrb[6].mxu0 %vm112_vm2, %v2912_v44  ;;  %v52_v44 = vld [vmem:[%s4817_s3 + $0x60] sm:$0xff] }
  0xb9   :  { %387 = vmatprep.mubr.f32.mxu0 %v3579_v7 }
  0xbc   :  { %2921 = vmatmul.mubr.msk.f32.gmra.mrb[8].mxu0 %vm112_vm2, %v2913_v45 }
  0xbd   :  { %393 = vmatprep.mubr.f32.mxu0 %v3579_v7 }
  0xc0   :  { %2922 = vmatmul.mubr.msk.f32.gmra.mrb[10].mxu0 %vm112_vm2, %v2914_v46 }
  0xc1   :  { %399 = vmatprep.mubr.f32.mxu0 %v3579_v7 }
  0xc4   :  { %2923 = vmatmul.mubr.msk.f32.gmra.mrb[12].mxu0 %vm112_vm2, %v2915_v47  ;;  %v53_v47 = vld [vmem:[%s4817_s3 + $0x68] sm:$0xff] }
  0xc5   :  { %405 = vmatprep.mubr.f32.mxu0 %v3579_v7 }
  0xc8   :  { %2924 = vmatmul.mubr.msk.f32.gmra.mrb[14].mxu0 %vm112_vm2, %v2916_v48 }
  0xc9   :  { %571 = vmatprep.mubr.f32.mxu0 %v3579_v7 }
  0xcc   :  { %2934 = vmatmul.mubr.msk.f32.vlgmr.msra.gmra.mrb[0].mxu0 %vm112_vm2, %v2926_v49  ;;  %v44_v49 = vld [vmem:[%s4817_s3 + $0x20] sm:$0xff] }
  0xcd   :  { %577 = vmatprep.mubr.f32.mxu0 %v3579_v7 }
  0xd0   :  { %2935 = vmatmul.mubr.msk.f32.gmra.mrb[2].mxu0 %vm112_vm2, %v2927_v51 }
  0xd1   :  { %583 = vmatprep.mubr.f32.mxu0 %v3579_v7 }
  0xd4   :  { %2936 = vmatmul.mubr.msk.f32.gmra.mrb[4].mxu0 %vm112_vm2, %v2928_v52 }
  0xd5   :  { %589 = vmatprep.mubr.f32.mxu0 %v3579_v7 }
  0xd8   :  { %2937 = vmatmul.mubr.msk.f32.gmra.mrb[6].mxu0 %vm112_vm2, %v2929_v53  ;;  %v45_v53 = vld [vmem:[%s4817_s3 + $0x28] sm:$0xff] }
  0xd9   :  { %595 = vmatprep.mubr.f32.mxu0 %v3579_v7 }
  0xdc   :  { %2938 = vmatmul.mubr.msk.f32.gmra.mrb[8].mxu0 %vm112_vm2, %v2930_v54 }
  0xdd   :  { %601 = vmatprep.mubr.f32.mxu0 %v3579_v7 }
  0xe0   :  { %2939 = vmatmul.mubr.msk.f32.gmra.mrb[10].mxu0 %vm112_vm2, %v2931_v55 }
  0xe1   :  { %607 = vmatprep.mubr.f32.mxu0 %v3579_v7 }
  0xe4   :  { %2940 = vmatmul.mubr.msk.f32.gmra.mrb[12].mxu0 %vm112_vm2, %v2932_v56 }
  0xe5   :  { %613 = vmatprep.mubr.f32.mxu0 %v3579_v7 }
  0xe8   :  { %2941 = vmatmul.mubr.msk.f32.gmra.mrb[14].mxu0 %vm112_vm2, %v2933_v57  ;;  %v54_v57 = vld [vmem:[%s4817_s3 + $0x70] sm:$0xff] }
  0xe9   :  { %1908 = vmatprep.mubr.f32.mxu0 %v3579_v7 }
 0x19f   :  { %v573_v63 = vpop.f32.mrb[0].mxu0 }
 0x1a0   :  { %v575_v0 = vpop.f32.mrb[1].mxu0  ;;  %v3248_v33 = vadd.f32 %v573_v63, %v40_v26 }
 0x1a1   :  { %v3249_v36 = vadd.f32 %v575_v0, %v41_v28 }
 0x1a3   :  { %v579_v15 = vpop.f32.mrb[2].mxu0 }
 0x1a4   :  { %v581_v16 = vpop.f32.mrb[3].mxu0  ;;  %v3250_v45 = vadd.f32 %v579_v15, %v42_v37 }
 0x1a5   :  { %v3251_v48 = vadd.f32 %v581_v16, %v43_v40  ;;  %v46_v16 = vld [vmem:[%s4817_s3 + $0x30] sm:$0xff] }
 0x1a7   :  { %v585_v17 = vpop.f32.mrb[4].mxu0 }
 0x1a8   :  { %v587_v20 = vpop.f32.mrb[5].mxu0  ;;  %v3252_v58 = vadd.f32 %v585_v17, %v44_v49  ;;  %v47_v17 = vld [vmem:[%s4817_s3 + $0x38] sm:$0xff] }
 0x1a9   :  { %v3253_v61 = vadd.f32 %v587_v20, %v45_v53 }
 0x1ab   :  { %v3928_v21 = vpop.f32.mrb[6].mxu0 }
 0x1ac   :  { %v3930_v22 = vpop.f32.mrb[7].mxu0 }
 0x1af   :  { %v597_v27 = vpop.f32.mrb[8].mxu0 }
 0x1b0   :  { %v3256_v29 = vadd.f32 %v597_v27, %v48_v23  ;;  %v599_v30 = vpop.f32.mrb[9].mxu0 }
 0x1b1   :  { %v3257_v31 = vadd.f32 %v599_v30, %v49_v25  ;;  %v3254_v30 = vadd.f32 %v3928_v21, %v46_v16 }
 0x1b2   :  { %v644_v34 = vmul.f32 0.5, %v3256_v29 }
 0x1b3   :  { %v645_v38 = vmul.f32 0.5, %v3257_v31  ;;  %v603_v39 = vpop.f32.mrb[10].mxu0 }
 0x1b4   :  { %3442 = vtanh.f32 %v644_v34  ;;  %v3258_v41 = vadd.f32 %v603_v39, %v50_v32  ;;  %v605_v42 = vpop.f32.mrb[11].mxu0 }
 0x1b5   :  { %3444 = vtanh.f32 %v645_v38  ;;  %v3259_v43 = vadd.f32 %v605_v42, %v51_v35 }
 0x1b6   :  { %3446 = vtanh.f32 %v3248_v33  ;;  %v646_v46 = vmul.f32 0.5, %v3258_v41  ;;  %v3255_v33 = vadd.f32 %v3930_v22, %v47_v17 }
 0x1b7   :  { %3448 = vtanh.f32 %v3249_v36  ;;  %v647_v51 = vmul.f32 0.5, %v3259_v43  ;;  %v609_v52 = vpop.f32.mrb[12].mxu0 }
 0x1b8   :  { %3450 = vtanh.f32 %v646_v46  ;;  %v3260_v54 = vadd.f32 %v609_v52, %v52_v44  ;;  %v611_v55 = vpop.f32.mrb[13].mxu0 }
 0x1b9   :  { %3452 = vtanh.f32 %v647_v51  ;;  %v3261_v56 = vadd.f32 %v611_v55, %v53_v47 }
 0x1ba   :  { %3454 = vtanh.f32 %v3250_v45  ;;  %v648_v59 = vmul.f32 0.5, %v3260_v54 }
 0x1bb   :  { %3456 = vtanh.f32 %v3251_v48  ;;  %v649_v62 = vmul.f32 0.5, %v3261_v56  ;;  %v615_v63 = vpop.f32.mrb[14].mxu0 }
 0x1bc   :  { %3458 = vtanh.f32 %v648_v59  ;;  %v3262_v0 = vadd.f32 %v615_v63, %v54_v57  ;;  %v617_v15 = vpop.f32.mrb[15].mxu0 }
 0x1bd   :  { %3460 = vtanh.f32 %v649_v62  ;;  %v3263_v23 = vadd.f32 %v617_v15, %v55_v60 }
 0x1be   :  { %v3443_v25 = vpop.eup %3442  ;;  %3462 = vtanh.f32 %v3252_v58  ;;  %v650_v26 = vmul.f32 0.5, %v3262_v0 }
 0x1bf   :  { %v3445_v27 = vpop.eup %3444  ;;  %3464 = vtanh.f32 %v3253_v61  ;;  %v660_v20 = vadd.f32 1.0, %v3443_v25  ;;  %v651_v28 = vmul.f32 0.5, %v3263_v23 }
 0x1c0   :  { %v3447_v29 = vpop.eup %3446  ;;  %v661_v31 = vadd.f32 1.0, %v3445_v27  ;;  %3466 = vtanh.f32 %v650_v26  ;;  %v684_v27 = vld [vmem:[%s4818_s4] sm:$0xff] }
 0x1c1   :  { %v3449_v32 = vpop.eup %3448  ;;  %v668_v34 = vmul.f32 0.5, %v660_v20  ;;  %3468 = vtanh.f32 %v651_v28  ;;  %v685_v20 = vld [vmem:[%s4818_s4 + $0x8] sm:$0xff]  ;;  %v686_v28 = vld [vmem:[%s4818_s4 + $0x10] sm:$0xff] }
 0x1c2   :  { %v3451_v35 = vpop.eup %3450  ;;  %v669_v36 = vmul.f32 0.5, %v661_v31  ;;  %3470 = vtanh.f32 %v3254_v30  ;;  %v703_v30 = vpop.permute.xlu0 %702 }
 0x1c3   :  { %v3453_v37 = vpop.eup %3452  ;;  %v662_v38 = vadd.f32 1.0, %v3451_v35  ;;  %v676_v39 = vmul.f32 %v3447_v29, %v668_v34  ;;  %3472 = vtanh.f32 %v3255_v33  ;;  %v687_v29 = vld [vmem:[%s4818_s4 + $0x18] sm:$0xff]  ;;  %v708_v34 = vpop.permute.xlu1 %707 }
 0x1c4   :  { %v3455_v40 = vpop.eup %3454  ;;  %v663_v41 = vadd.f32 1.0, %v3453_v37  ;;  %v677_v42 = vmul.f32 %v3449_v32, %v669_v36  ;;  %v688_v36 = vld [vmem:[%s4818_s4 + $0x20] sm:$0xff] }
 0x1c5   :  { %v3457_v43 = vpop.eup %3456  ;;  %v670_v44 = vmul.f32 0.5, %v662_v38 }
 0x1c6   :  { %v3459_v21 = vpop.eup %3458  ;;  %v671_v45 = vmul.f32 0.5, %v663_v41 }
 0x1c7   :  { %v3461_v46 = vpop.eup %3460  ;;  %v664_v47 = vadd.f32 1.0, %v3459_v21  ;;  %v678_v48 = vmul.f32 %v3455_v40, %v670_v44  ;;  %v689_v44 = vld [vmem:[%s4818_s4 + $0x28] sm:$0xff] }
 0x1c8   :  { %v3463_v22 = vpop.eup %3462  ;;  %v665_v49 = vadd.f32 1.0, %v3461_v46  ;;  %v679_v51 = vmul.f32 %v3457_v43, %v671_v45 }
 0x1c9   :  { %v3465_v52 = vpop.eup %3464  ;;  %v672_v53 = vmul.f32 0.5, %v664_v47  ;;  %v3162_v54 = vpack.c.bf16 %v678_v48, %v676_v39 }
 0x1ca   :  { %v3467_v55 = vpop.eup %3466  ;;  %v673_v56 = vmul.f32 0.5, %v665_v49  ;;  %v3160_v57 = vpack.c.bf16 %v679_v51, %v677_v42 }
 0x1cb   :  { %v3469_v58 = vpop.eup %3468  ;;  %v666_v59 = vadd.f32 1.0, %v3467_v55  ;;  %v680_v60 = vmul.f32 %v3463_v22, %v672_v53 }
 0x1cc   :  { %v667_v61 = vadd.f32 1.0, %v3469_v58  ;;  %3161 = vmatprep.subr.bf16.mxu1 %v3160_v57  ;;  %v681_v62 = vmul.f32 %v3465_v52, %v673_v56  ;;  %v3471_v0 = vpop.eup %3470  ;;  %v718_v52 = vpop.permute.xlu0 %717  ;;  %v691_v58 = vld [vmem:[%s4818_s4 + $0x38] sm:$0xff] }
 0x1cd   :  { %v674_v63 = vmul.f32 0.5, %v666_v59  ;;  %3163 = vmatpush1.bf16.msra.mxu1 %v3162_v54  ;;  %v3473_v16 = vpop.eup %3472 }
 0x1ce   :  { %v675_v15 = vmul.f32 0.5, %v667_v61 }
 0x1cf   :  { %v682_v23 = vmul.f32 %v3471_v0, %v674_v63  ;;  %v3025_v63 = vld [vmem:[%s4819_s5 + $0x50] sm:$0xff]  ;;  %v3026_v0 = vld [vmem:[%s4819_s5 + $0x58] sm:$0xff] }
 0x1d0   :  { %v683_v25 = vmul.f32 %v3473_v16, %v675_v15  ;;  %v943_v16 = vld [vmem:[%s4815_s1] sm:$0x3] }
 0x1d1   :  { %v3166_v17 = vpack.c.bf16 %v682_v23, %v680_v60 }
 0x1d2   :  { %v3164_v26 = vpack.c.bf16 %v683_v25, %v681_v62  ;;  %v3024_v62 = vld [vmem:[%s4819_s5 + $0x48] sm:$0xff] }
 0x1d4   :  { %3165 = vmatprep.subr.bf16.mxu1 %v3164_v26  ;;  %v952_v26 = vrot.slane %v943_v16, %v3718_v14 }
 0x1d5   :  { %3167 = vmatpush1.bf16.msra.mxu1 %v3166_v17  ;;  %v948_v17 = vrot.slane %v943_v16, %v3715_v13  ;;  %v2968_v16 = vld [vmem:[%s4816_s2 + $0xd0] sm:$0xff] }
 0x1d8   :  { %2942 = vmatmul.mubr.msk.f32.vlgmr.msra.gmra.mrb[0].mxu1 %vm112_vm2, %v684_v27 }
 0x1d9   :  { %834 = vmatprep.mubr.f32.mxu1 %v3579_v7 }
 0x1dc   :  { %2943 = vmatmul.mubr.msk.f32.gmra.mrb[2].mxu1 %vm112_vm2, %v685_v20 }
 0x1dd   :  { %840 = vmatprep.mubr.f32.mxu1 %v3579_v7 }
 0x1e0   :  { %2944 = vmatmul.mubr.msk.f32.gmra.mrb[4].mxu1 %vm112_vm2, %v686_v28 }
 0x1e1   :  { %846 = vmatprep.mubr.f32.mxu1 %v3579_v7 }
 0x1e4   :  { %2945 = vmatmul.mubr.msk.f32.gmra.mrb[6].mxu1 %vm112_vm2, %v687_v29 }
 0x1e5   :  { %852 = vmatprep.mubr.f32.mxu1 %v3579_v7 }
 0x1e8   :  { %2946 = vmatmul.mubr.msk.f32.gmra.mrb[8].mxu1 %vm112_vm2, %v688_v36 }
 0x1e9   :  { %858 = vmatprep.mubr.f32.mxu1 %v3579_v7 }
 0x1ec   :  { %2947 = vmatmul.mubr.msk.f32.gmra.mrb[10].mxu1 %vm112_vm2, %v689_v44 }
 0x1ed   :  { %864 = vmatprep.mubr.f32.mxu1 %v3579_v7 }
 0x2ab   :  { %v830_v31 = vpop.f32.mrb[0].mxu1 }
 0x2ac   :  { %v831_v32 = vadd.f32 %v830_v31, %v703_v30  ;;  %v832_v33 = vpop.f32.mrb[1].mxu1 }
 0x2ad   :  { %v833_v35 = vadd.f32 %v832_v33, %v703_v30 }
 0x2ae   :  { %v877_v37 = vadd.f32 %v831_v32, %v3642_v2  ;;  %v713_v2 = vpop.permute.xlu1 %712 }
 0x2af   :  { %v836_v38 = vpop.f32.mrb[2].mxu1  ;;  %v878_v40 = vadd.f32 %v833_v35, %v3637_v1 }
 0x2b0   :  { %v4008_v39 = vmul.f32 0.70710677, %v877_v37  ;;  %v837_v41 = vadd.f32 %v836_v38, %v708_v34  ;;  %v838_v42 = vpop.f32.mrb[3].mxu1 }
 0x2b1   :  { %v839_v43 = vadd.f32 %v838_v42, %v708_v34  ;;  %v4019_v1 = vmul.f32 0.70710677, %v878_v40 }
 0x2b2   :  { %v879_v21 = vadd.f32 %v837_v41, %v3656_v4  ;;  %918 = vrot.lane.b32.xlu1 %v4008_v39, %s3582_s17  ;;  %v690_v4 = vld [vmem:[%s4818_s4 + $0x30] sm:$0xff] }
 0x2b3   :  { %v842_v45 = vpop.f32.mrb[4].mxu1  ;;  %v880_v47 = vadd.f32 %v839_v43, %v3651_v3  ;;  %2948 = vmatmul.mubr.msk.f32.gmra.mrb[12].mxu1 %vm112_vm2, %v690_v4 }
 0x2b4   :  { %v4021_v46 = vmul.f32 0.70710677, %v879_v21  ;;  %v843_v48 = vadd.f32 %v842_v45, %v713_v2  ;;  %v844_v22 = vpop.f32.mrb[5].mxu1  ;;  %870 = vmatprep.mubr.f32.mxu1 %v3579_v7 }
 0x2b5   :  { %v845_v49 = vadd.f32 %v844_v22, %v713_v2  ;;  %v4033_v3 = vmul.f32 0.70710677, %v880_v47 }
 0x2b6   :  { %v881_v51 = vadd.f32 %v843_v48, %v3670_v6  ;;  %920 = vrot.lane.b32.xlu0 %v4021_v46, %s3582_s17  ;;  %926 = vrot.lane.b32.xlu1 %v4019_v1, %s3582_s17 }
 0x2b7   :  { %v848_v53 = vpop.f32.mrb[6].mxu1  ;;  %v882_v55 = vadd.f32 %v845_v49, %v3686_v9  ;;  %2949 = vmatmul.mubr.msk.f32.gmra.mrb[14].mxu1 %vm112_vm2, %v691_v58 }
 0x2b8   :  { %v4035_v54 = vmul.f32 0.70710677, %v881_v51  ;;  %v849_v56 = vadd.f32 %v848_v53, %v718_v52  ;;  %v850_v57 = vpop.f32.mrb[7].mxu1  ;;  %1060 = vmatprep.mubr.f32.mxu1 %v3579_v7 }
 0x2b9   :  { %v851_v6 = vadd.f32 %v850_v57, %v718_v52  ;;  %v4048_v9 = vmul.f32 0.70710677, %v882_v55  ;;  %v2998_v52 = vld [vmem:[%s4815_s1 + $0x6] sm:$0x3]  ;;  %v3176_v55 = vpack.c.bf16 %v4033_v3, %v4019_v1 }
 0x2ba   :  { %v883_v59 = vadd.f32 %v849_v56, %v3665_v5  ;;  %928 = vrot.lane.b32.xlu0 %v4033_v3, %s3582_s17  ;;  %922 = vrot.lane.b32.xlu1 %v4035_v54, %s3582_s17  ;;  %v2966_v56 = vld [vmem:[%s4816_s2 + $0xc0] sm:$0xff]  ;;  %v1322_v57 = vrot.slane %v2998_v52, %v3718_v14  ;;  %v2967_v14 = vld [vmem:[%s4816_s2 + $0xc8] sm:$0xff] }
 0x2bb   :  { %v884_v61 = vadd.f32 %v851_v6, %v3681_v8  ;;  %v3023_v8 = vld [vmem:[%s4819_s5 + $0x40] sm:$0xff] }
 0x2bc   :  { %v4050_v60 = vmul.f32 0.70710677, %v883_v59 }
 0x2bd   :  { %v4058_v5 = vmul.f32 0.70710677, %v884_v61  ;;  %v3178_v61 = vpack.c.bf16 %v4021_v46, %v4008_v39 }
 0x2be   :  { %924 = vrot.lane.b32.xlu0 %v4050_v60, %s3582_s17  ;;  %930 = vrot.lane.b32.xlu1 %v4048_v9, %s3582_s17 }
 0x2c2   :  { %932 = vrot.lane.b32.xlu0 %v4058_v5, %s3582_s17  ;;  %1287 = vrot.lane.b32.xlu1 %v4008_v39, %s3583_s22  ;;  %s3585_s17 = smov [#allocation3]  }
 0x2c3   :  { %s2892_s18 = sshll.u32 %s3585_s17, 4  ;;  %s2893_s18 = int_to_ptr.vmem [resolvable:$true] %s2892_s18 }
 0x2c4   :  { %p3559_p1 = scmp.lt.s32.totalorder %s2893_s18, %s2893_s18 }
 0x2c6   :  { %1289 = vrot.lane.b32.xlu0 %v4021_v46, %s3583_s22  ;;  %1295 = vrot.lane.b32.xlu1 %v4019_v1, %s3583_s22 }
 0x2ca   :  { %1297 = vrot.lane.b32.xlu0 %v4033_v3, %s3583_s22  ;;  %1291 = vrot.lane.b32.xlu1 %v4035_v54, %s3583_s22 }
 0x2ce   :  { %1293 = vrot.lane.b32.xlu0 %v4050_v60, %s3583_s22  ;;  %1299 = vrot.lane.b32.xlu1 %v4048_v9, %s3583_s22 }
 0x2d2   :  { %1301 = vrot.lane.b32.xlu0 %v4058_v5, %s3583_s22  ;;  %1563 = vperm.xlu1 %3441, %v3023_v8  }
 0x2d6   :  { %1568 = vperm.xlu0 %3440, %v3024_v62   ;;  %1573 = vperm.xlu1 %3441, %v3025_v63   ;;  %v3180_v62 = vpack.c.bf16 %v4058_v5, %v4048_v9 }
 0x2da   :  { %1578 = vperm.xlu0 %3440, %v3026_v0   ;;  %v3182_v0 = vpack.c.bf16 %v4050_v60, %v4035_v54 }
 0x324   :  { %v919_v15 = vpop.permute.xlu1 %918 }
 0x328   :  { %v921_v23 = vpop.permute.xlu0 %920  ;;  %v927_v25 = vpop.permute.xlu1 %926 }
 0x329   :  { %v935_v27 = vsel %vm934_vm3, %v919_v15, %v927_v25  ;;  %v939_v20 = vsel %vm934_vm3, %v927_v25, %v919_v15  ;;  %v2970_v25 = vld [vmem:[%s4816_s2 + $0xe0] sm:$0xff] }
 0x32a   :  { %v955_v32 = vmul.f32 %v948_v17, %v939_v20  ;;  %v956_v33 = vmul.f32 %v952_v26, %v935_v27  ;;  %v2972_v20 = vld [vmem:[%s4816_s2 + $0xf0] sm:$0xff] }
 0x32c   :  { %v929_v28 = vpop.permute.xlu0 %928  ;;  %v923_v29 = vpop.permute.xlu1 %922 }
 0x32d   :  { %v936_v30 = vsel %vm934_vm3, %v921_v23, %v929_v28  ;;  %v940_v31 = vsel %vm934_vm3, %v929_v28, %v921_v23  ;;  %v2969_v23 = vld [vmem:[%s4816_s2 + $0xd8] sm:$0xff] }
 0x32e   :  { %v957_v34 = vmul.f32 %v948_v17, %v940_v31  ;;  %v958_v35 = vmul.f32 %v952_v26, %v936_v30  ;;  %v1318_v31 = vrot.slane %v2998_v52, %v3715_v13  ;;  %v2988_v52 = vld [vmem:[%s4816_s2 + $0x130] sm:$0xff] }
 0x330   :  { %v3170_v36 = vpack.c.bf16 %v957_v34, %v955_v32  ;;  %v925_v37 = vpop.permute.xlu0 %924  ;;  %v931_v38 = vpop.permute.xlu1 %930  ;;  %v3168_v40 = vpack.c.bf16 %v958_v35, %v956_v33  ;;  %v2973_v33 = vld [vmem:[%s4816_s2 + $0xf8] sm:$0xff] }
 0x331   :  { %v937_v41 = vsel %vm934_vm3, %v923_v29, %v931_v38  ;;  %v941_v42 = vsel %vm934_vm3, %v931_v38, %v923_v29 }
 0x332   :  { %3169 = vmatprep.subr.bf16.mxu1 %v3168_v40  ;;  %v959_v45 = vmul.f32 %v948_v17, %v941_v42  ;;  %v960_v47 = vmul.f32 %v952_v26, %v937_v41  ;;  %v2982_v41 = vld [vmem:[%s4816_s2 + $0x100] sm:$0xff] }
 0x333   :  { %3171 = vmatpush1.bf16.msra.mxu1 %v3170_v36 }
 0x334   :  { %v933_v43 = vpop.permute.xlu0 %932  ;;  %v1288_v44 = vpop.permute.xlu1 %1287 }
 0x335   :  { %v938_v21 = vsel %vm934_vm3, %v925_v37, %v933_v43  ;;  %v942_v2 = vsel %vm934_vm3, %v933_v43, %v925_v37 }
 0x336   :  { %v961_v48 = vmul.f32 %v948_v17, %v942_v2  ;;  %v962_v22 = vmul.f32 %v952_v26, %v938_v21  ;;  %v2971_v26 = vld [vmem:[%s4816_s2 + $0xe8] sm:$0xff] }
 0x338   :  { %v3174_v49 = vpack.c.bf16 %v961_v48, %v959_v45  ;;  %v1290_v4 = vpop.permute.xlu0 %1289  ;;  %v3172_v51 = vpack.c.bf16 %v962_v22, %v960_v47  ;;  %v1296_v53 = vpop.permute.xlu1 %1295  ;;  %v2983_v47 = vld [vmem:[%s4816_s2 + $0x108] sm:$0xff]  ;;  %v2984_v22 = vld [vmem:[%s4816_s2 + $0x110] sm:$0xff] }
 0x339   :  { %v1308_v58 = vsel %vm1303_vm4, %v1296_v53, %v1288_v44  ;;  %v1304_v34 = vsel %vm1303_vm4, %v1288_v44, %v1296_v53  ;;  %v2989_v53 = vld [vmem:[%s4816_s2 + $0x138] sm:$0xff] }
 0x33a   :  { %3173 = vmatprep.subr.bf16.mxu1 %v3172_v51  ;;  %v1326_v63 = vmul.f32 %v1322_v57, %v1308_v58  ;;  %v1325_v40 = vmul.f32 %v1318_v31, %v1304_v34  ;;  %v2987_v51 = vld [vmem:[%s4816_s2 + $0x128] sm:$0xff]  ;;  %v3003_v58 = vld [vmem:[%s4816_s2 + $0x160] sm:$0xff] }
 0x33b   :  { %3175 = vmatpush1.bf16.msra.mxu1 %v3174_v49  ;;  %v2985_v49 = vld [vmem:[%s4816_s2 + $0x118] sm:$0xff] }
 0x33c   :  { %v1298_v6 = vpop.permute.xlu0 %1297  ;;  %3177 = vmatprep.subr.bf16.mxu1 %v3176_v55  ;;  %v1292_v27 = vpop.permute.xlu1 %1291  ;;  %v2999_v55 = vld [vmem:[%s4816_s2 + $0x140] sm:$0xff] }
 0x33d   :  { %v1309_v59 = vsel %vm1303_vm4, %v1298_v6, %v1290_v4  ;;  %v1305_v29 = vsel %vm1303_vm4, %v1290_v4, %v1298_v6  ;;  %v2986_v4 = vld [vmem:[%s4816_s2 + $0x120] sm:$0xff]  ;;  %v3002_v6 = vld [vmem:[%s4816_s2 + $0x158] sm:$0xff] }
 0x33e   :  { %v1328_v8 = vmul.f32 %v1322_v57, %v1309_v59  ;;  %2974 = vmatmul.mubr.msk.f32.vlgmr.msra.gmra.mrb[16].mxu1 %vm112_vm2, %v2966_v56  ;;  %v1327_v35 = vmul.f32 %v1318_v31, %v1305_v29  ;;  %v3000_v56 = vld [vmem:[%s4816_s2 + $0x148] sm:$0xff] }
 0x33f   :  { %3179 = vmatpush1.bf16.msra.mxu1 %v3178_v61  ;;  %1066 = vmatprep.mubr.f32.mxu1 %v3579_v7  ;;  %v3004_v59 = vld [vmem:[%s4816_s2 + $0x168] sm:$0xff]  ;;  %v3005_v61 = vld [vmem:[%s4816_s2 + $0x170] sm:$0xff] }
 0x340   :  { %3181 = vmatprep.subr.bf16.mxu1 %v3180_v62  ;;  %v3184_v15 = vpack.c.bf16 %v1328_v8, %v1326_v63  ;;  %v1294_v17 = vpop.permute.xlu0 %1293  ;;  %v1300_v30 = vpop.permute.xlu1 %1299  ;;  %v3186_v44 = vpack.c.bf16 %v1327_v35, %v1325_v40  ;;  %v3006_v8 = vld [vmem:[%s4816_s2 + $0x178] sm:$0xff] }
 0x341   :  { %v1310_v36 = vsel %vm1303_vm4, %v1300_v30, %v1292_v27  ;;  %v1306_v42 = vsel %vm1303_vm4, %v1292_v27, %v1300_v30  ;;  %v2950_v27 = vld [vmem:[%s4817_s3 + $0x80] sm:$0xff]  ;;  %v2961_v35 = vld [vmem:[%s4817_s3 + $0xd8] sm:$0xff] }
 0x342   :  { %2975 = vmatmul.mubr.msk.f32.gmra.mrb[18].mxu1 %vm112_vm2, %v2967_v14  ;;  %v1330_v43 = vmul.f32 %v1322_v57, %v1310_v36  ;;  %v1329_v45 = vmul.f32 %v1318_v31, %v1306_v42 }
 0x343   :  { %3183 = vmatpush1.bf16.msra.mxu1 %v3182_v0  ;;  %1072 = vmatprep.mubr.f32.mxu1 %v3579_v7 }
 0x344   :  { %3185 = vmatprep.subr.bf16.mxu1 %v3184_v15  ;;  %v1302_v28 = vpop.permute.xlu0 %1301 }
 0x345   :  { %v1311_v32 = vsel %vm1303_vm4, %v1302_v28, %v1294_v17  ;;  %v1307_v37 = vsel %vm1303_vm4, %v1294_v17, %v1302_v28  ;;  %v2958_v17 = vld [vmem:[%s4817_s3 + $0xc0] sm:$0xff]  ;;  %v2951_v28 = vld [vmem:[%s4817_s3 + $0x88] sm:$0xff] }
 0x346   :  { %2976 = vmatmul.mubr.msk.f32.gmra.mrb[20].mxu1 %vm112_vm2, %v2968_v16  ;;  %v1332_v38 = vmul.f32 %v1322_v57, %v1311_v32  ;;  %v1331_v21 = vmul.f32 %v1318_v31, %v1307_v37  ;;  %v3001_v57 = vld [vmem:[%s4816_s2 + $0x150] sm:$0xff] }
 0x347   :  { %1078 = vmatprep.mubr.f32.mxu1 %v3579_v7  ;;  %v2960_v32 = vld [vmem:[%s4817_s3 + $0xd0] sm:$0xff] }
 0x348   :  { %v3188_v2 = vpack.c.bf16 %v1332_v38, %v1330_v43  ;;  %v3190_v48 = vpack.c.bf16 %v1331_v21, %v1329_v45  ;;  %v2952_v37 = vld [vmem:[%s4817_s3 + $0x90] sm:$0xff]  ;;  %v2962_v21 = vld [vmem:[%s4817_s3 + $0xe0] sm:$0xff] }
 0x34a   :  { %2977 = vmatmul.mubr.msk.f32.gmra.mrb[22].mxu1 %vm112_vm2, %v2969_v23 }
 0x34b   :  { %1084 = vmatprep.mubr.f32.mxu1 %v3579_v7 }
 0x34e   :  { %2978 = vmatmul.mubr.msk.f32.gmra.mrb[24].mxu1 %vm112_vm2, %v2970_v25 }
 0x34f   :  { %1090 = vmatprep.mubr.f32.mxu1 %v3579_v7 }
 0x352   :  { %2979 = vmatmul.mubr.msk.f32.gmra.mrb[26].mxu1 %vm112_vm2, %v2971_v26  ;;  %v2959_v26 = vld [vmem:[%s4817_s3 + $0xc8] sm:$0xff] }
 0x353   :  { %1096 = vmatprep.mubr.f32.mxu1 %v3579_v7 }
 0x356   :  { %2980 = vmatmul.mubr.msk.f32.gmra.mrb[28].mxu1 %vm112_vm2, %v2972_v20 }
 0x357   :  { %1102 = vmatprep.mubr.f32.mxu1 %v3579_v7 }
 0x35a   :  { %2981 = vmatmul.mubr.msk.f32.gmra.mrb[30].mxu1 %vm112_vm2, %v2973_v33 }
 0x35b   :  { %1222 = vmatprep.mubr.f32.mxu1 %v3579_v7 }
 0x35e   :  { %2990 = vmatmul.mubr.msk.f32.vlgmr.msra.gmra.mrb[16].mxu1 %vm112_vm2, %v2982_v41  ;;  %v2953_v41 = vld [vmem:[%s4817_s3 + $0x98] sm:$0xff] }
 0x35f   :  { %3187 = vmatpush1.bf16.msra.mxu1 %v3186_v44  ;;  %1228 = vmatprep.mubr.f32.mxu1 %v3579_v7 }
 0x360   :  { %3189 = vmatprep.subr.bf16.mxu1 %v3188_v2 }
 0x362   :  { %2991 = vmatmul.mubr.msk.f32.gmra.mrb[18].mxu1 %vm112_vm2, %v2983_v47  ;;  %v2963_v47 = vld [vmem:[%s4817_s3 + $0xe8] sm:$0xff] }
 0x363   :  { %3191 = vmatpush1.bf16.msra.mxu1 %v3190_v48  ;;  %1234 = vmatprep.mubr.f32.mxu1 %v3579_v7 }
 0x366   :  { %2992 = vmatmul.mubr.msk.f32.gmra.mrb[20].mxu1 %vm112_vm2, %v2984_v22  ;;  %v2954_v22 = vld [vmem:[%s4817_s3 + $0xa0] sm:$0xff] }
 0x367   :  { %1240 = vmatprep.mubr.f32.mxu1 %v3579_v7 }
 0x36a   :  { %2993 = vmatmul.mubr.msk.f32.gmra.mrb[22].mxu1 %vm112_vm2, %v2985_v49 }
 0x36b   :  { %1246 = vmatprep.mubr.f32.mxu1 %v3579_v7 }
 0x36e   :  { %2994 = vmatmul.mubr.msk.f32.gmra.mrb[24].mxu1 %vm112_vm2, %v2986_v4 }
 0x36f   :  { %1252 = vmatprep.mubr.f32.mxu1 %v3579_v7 }
 0x372   :  { %2995 = vmatmul.mubr.msk.f32.gmra.mrb[26].mxu1 %vm112_vm2, %v2987_v51  ;;  %v2955_v51 = vld [vmem:[%s4817_s3 + $0xa8] sm:$0xff] }
 0x373   :  { %1258 = vmatprep.mubr.f32.mxu1 %v3579_v7 }
 0x376   :  { %2996 = vmatmul.mubr.msk.f32.gmra.mrb[28].mxu1 %vm112_vm2, %v2988_v52 }
 0x377   :  { %1264 = vmatprep.mubr.f32.mxu1 %v3579_v7 }
 0x37a   :  { %2997 = vmatmul.mubr.msk.f32.gmra.mrb[30].mxu1 %vm112_vm2, %v2989_v53 }
 0x37b   :  { %1430 = vmatprep.mubr.f32.mxu1 %v3579_v7 }
 0x37e   :  { %3007 = vmatmul.mubr.msk.f32.vlgmr.msra.gmra.mrb[16].mxu1 %vm112_vm2, %v2999_v55 }
 0x37f   :  { %1436 = vmatprep.mubr.f32.mxu1 %v3579_v7 }
 0x382   :  { %3008 = vmatmul.mubr.msk.f32.gmra.mrb[18].mxu1 %vm112_vm2, %v3000_v56  ;;  %v2964_v56 = vld [vmem:[%s4817_s3 + $0xf0] sm:$0xff] }
 0x383   :  { %1442 = vmatprep.mubr.f32.mxu1 %v3579_v7 }
 0x386   :  { %3009 = vmatmul.mubr.msk.f32.gmra.mrb[20].mxu1 %vm112_vm2, %v3001_v57 }
 0x387   :  { %1448 = vmatprep.mubr.f32.mxu1 %v3579_v7 }
 0x38a   :  { %3010 = vmatmul.mubr.msk.f32.gmra.mrb[22].mxu1 %vm112_vm2, %v3002_v6 }
 0x38b   :  { %1454 = vmatprep.mubr.f32.mxu1 %v3579_v7 }
 0x38e   :  { %3011 = vmatmul.mubr.msk.f32.gmra.mrb[24].mxu1 %vm112_vm2, %v3003_v58  ;;  %v2965_v58 = vld [vmem:[%s4817_s3 + $0xf8] sm:$0xff] }
 0x38f   :  { %1460 = vmatprep.mubr.f32.mxu1 %v3579_v7 }
 0x392   :  { %3012 = vmatmul.mubr.msk.f32.gmra.mrb[26].mxu1 %vm112_vm2, %v3004_v59 }
 0x393   :  { %1466 = vmatprep.mubr.f32.mxu1 %v3579_v7 }
 0x396   :  { %3013 = vmatmul.mubr.msk.f32.gmra.mrb[28].mxu1 %vm112_vm2, %v3005_v61 }
 0x397   :  { %1472 = vmatprep.mubr.f32.mxu1 %v3579_v7 }
 0x39a   :  { %3014 = vmatmul.mubr.msk.f32.gmra.mrb[30].mxu1 %vm112_vm2, %v3006_v8 }
 0x39b   :  { %1689 = vmatprep.mubr.f32.mxu1 %v3579_v7 }
 0x451   :  { %v1432_v62 = vpop.f32.mrb[16].mxu1 }
 0x452   :  { %v1434_v14 = vpop.f32.mrb[17].mxu1  ;;  %v3288_v33 = vadd.f32 %v2950_v27, %v1432_v62 }
 0x453   :  { %v3289_v36 = vadd.f32 %v2951_v28, %v1434_v14 }
 0x455   :  { %v1438_v63 = vpop.f32.mrb[18].mxu1 }
 0x456   :  { %v1440_v0 = vpop.f32.mrb[19].mxu1  ;;  %v3290_v2 = vadd.f32 %v2952_v37, %v1438_v63  ;;  %v2956_v63 = vld [vmem:[%s4817_s3 + $0xb0] sm:$0xff] }
 0x457   :  { %v3291_v48 = vadd.f32 %v2953_v41, %v1440_v0 }
 0x459   :  { %v1444_v15 = vpop.f32.mrb[20].mxu1 }
 0x45a   :  { %v1446_v16 = vpop.f32.mrb[21].mxu1  ;;  %v3292_v57 = vadd.f32 %v2954_v22, %v1444_v15  ;;  %v2957_v15 = vld [vmem:[%s4817_s3 + $0xb8] sm:$0xff] }
 0x45b   :  { %v3293_v59 = vadd.f32 %v2955_v51, %v1446_v16 }
 0x45d   :  { %v4254_v23 = vpop.f32.mrb[22].mxu1 }
 0x45e   :  { %v4256_v25 = vpop.f32.mrb[23].mxu1 }
 0x461   :  { %v1456_v20 = vpop.f32.mrb[24].mxu1 }
 0x462   :  { %v3296_v29 = vadd.f32 %v2958_v17, %v1456_v20  ;;  %v1458_v30 = vpop.f32.mrb[25].mxu1 }
 0x463   :  { %v3297_v31 = vadd.f32 %v2959_v26, %v1458_v30 }
 0x464   :  { %v1503_v34 = vmul.f32 0.5, %v3296_v29  ;;  %v3294_v29 = vadd.f32 %v2956_v63, %v4254_v23 }
 0x465   :  { %v1504_v38 = vmul.f32 0.5, %v3297_v31  ;;  %v1462_v40 = vpop.f32.mrb[26].mxu1 }
 0x466   :  { %3474 = vtanh.f32 %v1503_v34  ;;  %v3298_v42 = vadd.f32 %v2960_v32, %v1462_v40  ;;  %v1464_v43 = vpop.f32.mrb[27].mxu1  ;;  %v3295_v32 = vadd.f32 %v2957_v15, %v4256_v25 }
 0x467   :  { %3476 = vtanh.f32 %v1504_v38  ;;  %v3299_v44 = vadd.f32 %v2961_v35, %v1464_v43 }
 0x468   :  { %3478 = vtanh.f32 %v3288_v33  ;;  %v1505_v45 = vmul.f32 0.5, %v3298_v42 }
 0x469   :  { %3480 = vtanh.f32 %v3289_v36  ;;  %v1506_v49 = vmul.f32 0.5, %v3299_v44  ;;  %v1468_v4 = vpop.f32.mrb[28].mxu1 }
 0x46a   :  { %3482 = vtanh.f32 %v1505_v45  ;;  %v3300_v52 = vadd.f32 %v2962_v21, %v1468_v4  ;;  %v1470_v53 = vpop.f32.mrb[29].mxu1 }
 0x46b   :  { %3484 = vtanh.f32 %v1506_v49  ;;  %v3301_v55 = vadd.f32 %v2963_v47, %v1470_v53 }
 0x46c   :  { %3486 = vtanh.f32 %v3290_v2  ;;  %v1507_v6 = vmul.f32 0.5, %v3300_v52 }
 0x46d   :  { %3488 = vtanh.f32 %v3291_v48  ;;  %v1508_v61 = vmul.f32 0.5, %v3301_v55  ;;  %v1474_v8 = vpop.f32.mrb[30].mxu1 }
 0x46e   :  { %3490 = vtanh.f32 %v1507_v6  ;;  %v3302_v62 = vadd.f32 %v2964_v56, %v1474_v8  ;;  %v1476_v14 = vpop.f32.mrb[31].mxu1 }
 0x46f   :  { %3492 = vtanh.f32 %v1508_v61  ;;  %v3303_v0 = vadd.f32 %v2965_v58, %v1476_v14 }
 0x470   :  { %v3475_v17 = vpop.eup %3474  ;;  %3494 = vtanh.f32 %v3292_v57  ;;  %v1509_v26 = vmul.f32 0.5, %v3302_v62 }
 0x471   :  { %v3477_v27 = vpop.eup %3476  ;;  %3496 = vtanh.f32 %v3293_v59  ;;  %v1519_v16 = vadd.f32 1.0, %v3475_v17  ;;  %v1510_v20 = vmul.f32 0.5, %v3303_v0 }
 0x472   :  { %v3479_v28 = vpop.eup %3478  ;;  %v1520_v30 = vadd.f32 1.0, %v3477_v27  ;;  %3498 = vtanh.f32 %v1509_v26  ;;  %v3015_v26 = vld [vmem:[%s4818_s4 + $0x40] sm:$0xff]  ;;  %v3016_v27 = vld [vmem:[%s4818_s4 + $0x48] sm:$0xff] }
 0x473   :  { %v3481_v31 = vpop.eup %3480  ;;  %v1527_v33 = vmul.f32 0.5, %v1519_v16  ;;  %3500 = vtanh.f32 %v1510_v20  ;;  %v3017_v16 = vld [vmem:[%s4818_s4 + $0x50] sm:$0xff]  ;;  %v3018_v20 = vld [vmem:[%s4818_s4 + $0x58] sm:$0xff] }
 0x474   :  { %v3483_v34 = vpop.eup %3482  ;;  %v1528_v35 = vmul.f32 0.5, %v1520_v30  ;;  %3502 = vtanh.f32 %v3294_v29 }
 0x475   :  { %v3485_v36 = vpop.eup %3484  ;;  %v1535_v37 = vmul.f32 %v3479_v28, %v1527_v33  ;;  %v1521_v38 = vadd.f32 1.0, %v3483_v34  ;;  %3504 = vtanh.f32 %v3295_v32  ;;  %v1564_v28 = vpop.permute.xlu1 %1563 }
 0x476   :  { %v3487_v40 = vpop.eup %3486  ;;  %v1522_v41 = vadd.f32 1.0, %v3485_v36  ;;  %v1536_v42 = vmul.f32 %v3481_v31, %v1528_v35  ;;  %v1569_v34 = vpop.permute.xlu0 %1568 }
 0x477   :  { %v3489_v43 = vpop.eup %3488  ;;  %v1529_v44 = vmul.f32 0.5, %v1521_v38 }
 0x478   :  { %v3491_v23 = vpop.eup %3490  ;;  %v1530_v21 = vmul.f32 0.5, %v1522_v41 }
 0x479   :  { %v3493_v2 = vpop.eup %3492  ;;  %v1537_v45 = vmul.f32 %v3487_v40, %v1529_v44  ;;  %v1523_v47 = vadd.f32 1.0, %v3491_v23 }
 0x47a   :  { %v3495_v25 = vpop.eup %3494  ;;  %v1524_v48 = vadd.f32 1.0, %v3493_v2  ;;  %v1538_v22 = vmul.f32 %v3489_v43, %v1530_v21  ;;  %v1574_v43 = vpop.permute.xlu1 %1573 }
 0x47b   :  { %v3497_v49 = vpop.eup %3496  ;;  %v1531_v4 = vmul.f32 0.5, %v1523_v47  ;;  %v3194_v51 = vpack.c.bf16 %v1537_v45, %v1535_v37 }
 0x47c   :  { %v3499_v52 = vpop.eup %3498  ;;  %v1532_v53 = vmul.f32 0.5, %v1524_v48  ;;  %v3192_v55 = vpack.c.bf16 %v1538_v22, %v1536_v42 }
 0x47d   :  { %v3501_v56 = vpop.eup %3500  ;;  %v1539_v57 = vmul.f32 %v3495_v25, %v1531_v4  ;;  %v1525_v6 = vadd.f32 1.0, %v3499_v52 }
 0x47e   :  { %v1526_v58 = vadd.f32 1.0, %v3501_v56  ;;  %3193 = vmatprep.subr.bf16.mxu1 %v3192_v55  ;;  %v1540_v59 = vmul.f32 %v3497_v49, %v1532_v53  ;;  %v3503_v8 = vpop.eup %3502 }
 0x47f   :  { %v1533_v61 = vmul.f32 0.5, %v1525_v6  ;;  %3195 = vmatpush1.bf16.msra.mxu1 %v3194_v51  ;;  %v3505_v14 = vpop.eup %3504 }
 0x480   :  { %v1534_v62 = vmul.f32 0.5, %v1526_v58  ;;  %v697_v58 = vld [vmem:[%s4819_s5 + $0x28] sm:$0xff] }
 0x481   :  { %v1541_v63 = vmul.f32 %v3503_v8, %v1533_v61  ;;  %v3028_v61 = vld [vmem:[%s4819_s5 + $0x68] sm:$0xff]  ;;  %v3115_v8 = vld [vmem:[%s4819_s5 + $0xa0] sm:$0xff] }
 0x482   :  { %v1542_v0 = vmul.f32 %v3505_v14, %v1534_v62  ;;  %v3116_v62 = vld [vmem:[%s4819_s5 + $0xa8] sm:$0xff]  ;;  %v698_v14 = vld [vmem:[%s4819_s5 + $0x30] sm:$0xff] }
 0x483   :  { %v3198_v17 = vpack.c.bf16 %v1541_v63, %v1539_v57  ;;  %v699_v63 = vld [vmem:[%s4819_s5 + $0x38] sm:$0xff] }
 0x484   :  { %v3196_v15 = vpack.c.bf16 %v1542_v0, %v1540_v59  ;;  %v3027_v59 = vld [vmem:[%s4819_s5 + $0x60] sm:$0xff]  ;;  %v3029_v0 = vld [vmem:[%s4819_s5 + $0x70] sm:$0xff] }
 0x486   :  { %3197 = vmatprep.subr.bf16.mxu1 %v3196_v15  ;;  %v3117_v15 = vld [vmem:[%s4819_s5 + $0xb0] sm:$0xff] }
 0x487   :  { %3199 = vmatpush1.bf16.msra.mxu1 %v3198_v17  ;;  %v3030_v17 = vld [vmem:[%s4819_s5 + $0x78] sm:$0xff] }
 0x48a   :  { %3031 = vmatmul.mubr.msk.f32.vlgmr.msra.gmra.mrb[32].mxu1 %vm112_vm2, %v3015_v26  ;;  %v3118_v26 = vld [vmem:[%s4819_s5 + $0xb8] sm:$0xff] }
 0x48b   :  { %1695 = vmatprep.mubr.f32.mxu1 %v3579_v7 }
 0x48e   :  { %3032 = vmatmul.mubr.msk.f32.gmra.mrb[34].mxu1 %vm112_vm2, %v3016_v27  ;;  %v3127_v27 = vld [vmem:[%s4819_s5 + $0xc0] sm:$0xff] }
 0x48f   :  { %1701 = vmatprep.mubr.f32.mxu1 %v3579_v7 }
 0x492   :  { %3033 = vmatmul.mubr.msk.f32.gmra.mrb[36].mxu1 %vm112_vm2, %v3017_v16  ;;  %v3128_v16 = vld [vmem:[%s4819_s5 + $0xc8] sm:$0xff] }
 0x493   :  { %1707 = vmatprep.mubr.f32.mxu1 %v3579_v7 }
 0x496   :  { %3034 = vmatmul.mubr.msk.f32.gmra.mrb[38].mxu1 %vm112_vm2, %v3018_v20  ;;  %v3129_v20 = vld [vmem:[%s4819_s5 + $0xd0] sm:$0xff] }
 0x497   :  { %1713 = vmatprep.mubr.f32.mxu1 %v3579_v7 }
 0x55d   :  { %v1691_v29 = vpop.f32.mrb[32].mxu1 }
 0x55e   :  { %v1692_v30 = vadd.f32 %v1691_v29, %v1564_v28  ;;  %v1693_v31 = vpop.f32.mrb[33].mxu1  ;;  %v2779_v29 = vld [vmem:[#allocation2] sm:$0x1] }
 0x55f   :  { %v1694_v32 = vadd.f32 %v1693_v31, %v1564_v28  ;;  %v3130_v28 = vld [vmem:[%s4819_s5 + $0xd8] sm:$0xff] }
 0x560   :  { %v1738_v33 = vadd.f32 %v1692_v30, %v4008_v39 }
 0x561   :  { %v1697_v35 = vpop.f32.mrb[34].mxu1  ;;  %v1739_v37 = vadd.f32 %v1694_v32, %v4019_v1 }
 0x562   :  { %v4329_v36 = vmul.f32 0.70710677, %v1738_v33  ;;  %v1698_v38 = vadd.f32 %v1697_v35, %v1569_v34  ;;  %v1699_v40 = vpop.f32.mrb[35].mxu1 }
 0x563   :  { %v1700_v41 = vadd.f32 %v1699_v40, %v1569_v34  ;;  %v4336_v21 = vmul.f32 0.70710677, %v1739_v37 }
 0x564   :  { %v1740_v42 = vadd.f32 %v1698_v38, %v4021_v46  ;;  %1779 = vrot.lane.b32.xlu1 %v4329_v36, %s3578_s11 }
 0x565   :  { %v1741_v44 = vadd.f32 %v1700_v41, %v4033_v3  ;;  %v1703_v23 = vpop.f32.mrb[36].mxu1  ;;  %v1579_v3 = vpop.permute.xlu0 %1578 }
 0x566   :  { %v4338_v39 = vmul.f32 0.70710677, %v1740_v42  ;;  %v1704_v2 = vadd.f32 %v1703_v23, %v1574_v43  ;;  %v1705_v45 = vpop.f32.mrb[37].mxu1 }
 0x567   :  { %v4340_v47 = vmul.f32 0.70710677, %v1741_v44  ;;  %v1706_v1 = vadd.f32 %v1705_v45, %v1574_v43 }
 0x568   :  { %v1742_v25 = vadd.f32 %v1704_v2, %v4035_v54  ;;  %1781 = vrot.lane.b32.xlu0 %v4338_v39, %s3578_s11  ;;  %1787 = vrot.lane.b32.xlu1 %v4336_v21, %s3578_s11  ;;  %v3210_v46 = vpack.c.bf16 %v4338_v39, %v4329_v36 }
 0x569   :  { %v1709_v48 = vpop.f32.mrb[38].mxu1  ;;  %v3208_v22 = vpack.c.bf16 %v4340_v47, %v4336_v21  ;;  %v1743_v4 = vadd.f32 %v1706_v1, %v4048_v9 }
 0x56a   :  { %v4351_v49 = vmul.f32 0.70710677, %v1742_v25  ;;  %v1710_v51 = vadd.f32 %v1709_v48, %v1579_v3  ;;  %v1711_v54 = vpop.f32.mrb[39].mxu1 }
 0x56b   :  { %v1712_v52 = vadd.f32 %v1711_v54, %v1579_v3  ;;  %v4360_v56 = vmul.f32 0.70710677, %v1743_v4 }
 0x56c   :  { %v1744_v53 = vadd.f32 %v1710_v51, %v4050_v60  ;;  %1789 = vrot.lane.b32.xlu0 %v4340_v47, %s3578_s11  ;;  %1783 = vrot.lane.b32.xlu1 %v4351_v49, %s3578_s11 }
 0x56d   :  { %v1745_v55 = vadd.f32 %v1712_v52, %v4058_v5  ;;  %v696_v5 = vld [vmem:[%s4819_s5 + $0x20] sm:$0xff] }
 0x56e   :  { %v4362_v57 = vmul.f32 0.70710677, %v1744_v53 }
 0x56f   :  { %v4364_v6 = vmul.f32 0.70710677, %v1745_v55 }
 0x570   :  { %1785 = vrot.lane.b32.xlu0 %v4362_v57, %s3578_s11  ;;  %1791 = vrot.lane.b32.xlu1 %v4360_v56, %s3578_s11  ;;  %v3214_v9 = vpack.c.bf16 %v4362_v57, %v4351_v49 }
 0x571   :  { %v3212_v60 = vpack.c.bf16 %v4364_v6, %v4360_v56 }
 0x574   :  { %1793 = vrot.lane.b32.xlu0 %v4364_v6, %s3578_s11  ;;  %2135 = vrot.lane.b32.xlu1 %v4329_v36, %s3580_s23  ;;  %v3057_v36 = vld [vmem:[%s4816_s2 + $0x190] sm:$0xff] }
 0x578   :  { %2137 = vrot.lane.b32.xlu0 %v4338_v39, %s3580_s23  ;;  %2143 = vrot.lane.b32.xlu1 %v4336_v21, %s3580_s23  ;;  %v3056_v21 = vld [vmem:[%s4816_s2 + $0x188] sm:$0xff]  ;;  %v3058_v39 = vld [vmem:[%s4816_s2 + $0x198] sm:$0xff] }
 0x57c   :  { %2145 = vrot.lane.b32.xlu0 %v4340_v47, %s3580_s23  ;;  %2139 = vrot.lane.b32.xlu1 %v4351_v49, %s3580_s23 }
 0x580   :  { %2141 = vrot.lane.b32.xlu0 %v4362_v57, %s3580_s23  ;;  %2147 = vrot.lane.b32.xlu1 %v4360_v56, %s3580_s23  ;;  %v3060_v56 = vld [vmem:[%s4816_s2 + $0x1a8] sm:$0xff] }
 0x584   :  { %2149 = vrot.lane.b32.xlu0 %v4364_v6, %s3580_s23  ;;  %722 = vperm.xlu1 %3441, %v696_v5   ;;  %v3061_v6 = vld [vmem:[%s4816_s2 + $0x1b0] sm:$0xff] }
 0x588   :  { %727 = vperm.xlu0 %3440, %v697_v58   ;;  %1583 = vperm.xlu1 %3441, %v3027_v59  }
 0x58c   :  { %1588 = vperm.xlu0 %3440, %v3028_v61   ;;  %2413 = vperm.xlu1 %3441, %v3115_v8  }
 0x590   :  { %2418 = vperm.xlu0 %3440, %v3116_v62   ;;  %732 = vperm.xlu1 %3441, %v698_v14   ;;  %v3055_v62 = vld [vmem:[%s4816_s2 + $0x180] sm:$0xff] }
 0x594   :  { %737 = vperm.xlu0 %3440, %v699_v63   ;;  %1593 = vperm.xlu1 %3441, %v3029_v0  }
 0x598   :  { %1598 = vperm.xlu0 %3440, %v3030_v17   ;;  %2423 = vperm.xlu1 %3441, %v3117_v15   ;;  %v3062_v15 = vld [vmem:[%s4816_s2 + $0x1b8] sm:$0xff] }
 0x59c   :  { %2428 = vperm.xlu0 %3440, %v3118_v26   ;;  %2588 = vperm.xlu1 %3441, %v3127_v27  }
 0x5a0   :  { %2593 = vperm.xlu0 %3440, %v3128_v16   ;;  %2598 = vperm.xlu1 %3441, %v3129_v20  }
 0x5a4   :  { %2603 = vperm.xlu0 %3440, %v3130_v28   ;;  %2782 = vperm.xlu1 %3441, %v2779_v29  }
 0x5d6   :  { %v1780_v30 = vpop.permute.xlu1 %1779 }
 0x5da   :  { %v1782_v31 = vpop.permute.xlu0 %1781  ;;  %v1788_v32 = vpop.permute.xlu1 %1787 }
 0x5db   :  { %v1795_v33 = vsel %vm74_vm0, %v1780_v30, %v1788_v32  ;;  %v1799_v34 = vsel %vm74_vm0, %v1788_v32, %v1780_v30  ;;  %v3071_v30 = vld [vmem:[%s4816_s2 + $0x1c0] sm:$0xff] }
 0x5dc   :  { %v1803_v41 = vmul.f32 %v1799_v34, %v3725_v18  ;;  %v1804_v42 = vmul.f32 %v1795_v33, %v3728_v19 }
 0x5de   :  { %v1790_v35 = vpop.permute.xlu0 %1789  ;;  %v1784_v37 = vpop.permute.xlu1 %1783 }
 0x5df   :  { %v1796_v38 = vsel %vm74_vm0, %v1782_v31, %v1790_v35  ;;  %v1800_v40 = vsel %vm74_vm0, %v1790_v35, %v1782_v31 }
 0x5e0   :  { %v1805_v43 = vmul.f32 %v1800_v40, %v3725_v18  ;;  %v1806_v44 = vmul.f32 %v1796_v38, %v3728_v19  ;;  %v3072_v38 = vld [vmem:[%s4816_s2 + $0x1c8] sm:$0xff]  ;;  %v3075_v40 = vld [vmem:[%s4816_s2 + $0x1e0] sm:$0xff] }
 0x5e2   :  { %v3202_v23 = vpack.c.bf16 %v1805_v43, %v1803_v41  ;;  %v1786_v2 = vpop.permute.xlu0 %1785  ;;  %v1792_v45 = vpop.permute.xlu1 %1791  ;;  %v3200_v1 = vpack.c.bf16 %v1806_v44, %v1804_v42  ;;  %v3076_v41 = vld [vmem:[%s4816_s2 + $0x1e8] sm:$0xff]  ;;  %v3077_v42 = vld [vmem:[%s4816_s2 + $0x1f0] sm:$0xff]  ;;  %v3078_v43 = vld [vmem:[%s4816_s2 + $0x1f8] sm:$0xff] }
 0x5e3   :  { %v1797_v25 = vsel %vm74_vm0, %v1784_v37, %v1792_v45  ;;  %v1801_v3 = vsel %vm74_vm0, %v1792_v45, %v1784_v37  ;;  %v3087_v44 = vld [vmem:[%s4816_s2 + $0x200] sm:$0xff]  ;;  %v3090_v45 = vld [vmem:[%s4816_s2 + $0x218] sm:$0xff] }
 0x5e4   :  { %3201 = vmatprep.subr.bf16.mxu0 %v3200_v1  ;;  %v1807_v52 = vmul.f32 %v1801_v3, %v3725_v18  ;;  %v1808_v53 = vmul.f32 %v1797_v25, %v3728_v19  ;;  %v3091_v1 = vld [vmem:[%s4816_s2 + $0x220] sm:$0xff]  ;;  %v3092_v25 = vld [vmem:[%s4816_s2 + $0x228] sm:$0xff]  ;;  %v3093_v3 = vld [vmem:[%s4816_s2 + $0x230] sm:$0xff] }
 0x5e5   :  { %3203 = vmatpush1.bf16.msra.mxu0 %v3202_v23  ;;  %v3088_v23 = vld [vmem:[%s4816_s2 + $0x208] sm:$0xff] }
 0x5e6   :  { %v1794_v48 = vpop.permute.xlu0 %1793  ;;  %v2136_v4 = vpop.permute.xlu1 %2135 }
 0x5e7   :  { %v1798_v51 = vsel %vm74_vm0, %v1786_v2, %v1794_v48  ;;  %v1802_v54 = vsel %vm74_vm0, %v1794_v48, %v1786_v2  ;;  %v3089_v2 = vld [vmem:[%s4816_s2 + $0x210] sm:$0xff]  ;;  %v3094_v48 = vld [vmem:[%s4816_s2 + $0x238] sm:$0xff] }
 0x5e8   :  { %v1809_v55 = vmul.f32 %v1802_v54, %v3725_v18  ;;  %v1810_v5 = vmul.f32 %v1798_v51, %v3728_v19  ;;  %v3020_v51 = vld [vmem:[%s4818_s4 + $0x68] sm:$0xff]  ;;  %v3021_v54 = vld [vmem:[%s4818_s4 + $0x70] sm:$0xff] }
 0x5ea   :  { %v3206_v58 = vpack.c.bf16 %v1809_v55, %v1807_v52  ;;  %v2138_v59 = vpop.permute.xlu0 %2137  ;;  %v3204_v61 = vpack.c.bf16 %v1810_v5, %v1808_v53  ;;  %v2144_v8 = vpop.permute.xlu1 %2143  ;;  %v3022_v52 = vld [vmem:[%s4818_s4 + $0x78] sm:$0xff] }
 0x5eb   :  { %v2155_v18 = vsel %vm444_vm1, %v2144_v8, %v2136_v4  ;;  %v2151_v26 = vsel %vm444_vm1, %v2136_v4, %v2144_v8  ;;  %v3019_v4 = vld [vmem:[%s4818_s4 + $0x60] sm:$0xff] }
 0x5ec   :  { %3205 = vmatprep.subr.bf16.mxu0 %v3204_v61  ;;  %v2160_v47 = vmul.f32 %v2155_v18, %v3761_v50  ;;  %v2159_v29 = vmul.f32 %v2151_v26, %v3809_v24  ;;  %3035 = vmatmul.mubr.msk.f32.gmra.mrb[8].mxu1 %vm112_vm2, %v3019_v4  ;;  %v3048_v18 = vld [vmem:[%s4817_s3 + $0x148] sm:$0xff] }
 0x5ed   :  { %3207 = vmatpush1.bf16.msra.mxu0 %v3206_v58  ;;  %1719 = vmatprep.mubr.f32.mxu1 %v3579_v7 }
 0x5ee   :  { %v2146_v14 = vpop.permute.xlu0 %2145  ;;  %3209 = vmatprep.subr.bf16.mxu0 %v3208_v22  ;;  %v2140_v57 = vpop.permute.xlu1 %2139 }
 0x5ef   :  { %v2156_v19 = vsel %vm444_vm1, %v2146_v14, %v2138_v59 }
 0x5f0   :  { %v2162_v63 = vmul.f32 %v2156_v19, %v3761_v50  ;;  %3063 = vmatmul.mubr.msk.f32.vlgmr.msra.gmra.mrb[16].mxu0 %vm112_vm2, %v3055_v62  ;;  %3036 = vmatmul.mubr.msk.f32.gmra.mrb[10].mxu1 %vm112_vm2, %v3020_v51  ;;  %v3039_v19 = vld [vmem:[%s4817_s3 + $0x100] sm:$0xff] }
 0x5f1   :  { %3211 = vmatpush1.bf16.msra.mxu0 %v3210_v46  ;;  %1914 = vmatprep.mubr.f32.mxu0 %v3579_v7  ;;  %v3059_v46 = vld [vmem:[%s4816_s2 + $0x1a0] sm:$0xff] }
 0x5f2   :  { %3213 = vmatprep.subr.bf16.mxu0 %v3212_v60  ;;  %v3216_v22 = vpack.c.bf16 %v2162_v63, %v2160_v47  ;;  %v2142_v49 = vpop.permute.xlu0 %2141  ;;  %v2152_v60 = vsel %vm444_vm1, %v2138_v59, %v2146_v14  ;;  %v2148_v0 = vpop.permute.xlu1 %2147  ;;  %1725 = vmatprep.mubr.f32.mxu1 %v3579_v7  ;;  %v3047_v14 = vld [vmem:[%s4817_s3 + $0x140] sm:$0xff] }
 0x5f3   :  { %v2161_v27 = vmul.f32 %v2152_v60, %v3809_v24  ;;  %v2157_v16 = vsel %vm444_vm1, %v2148_v0, %v2140_v57  ;;  %v2153_v31 = vsel %vm444_vm1, %v2140_v57, %v2148_v0  ;;  %v3042_v0 = vld [vmem:[%s4817_s3 + $0x118] sm:$0xff] }
 0x5f4   :  { %3064 = vmatmul.mubr.msk.f32.gmra.mrb[18].mxu0 %vm112_vm2, %v3056_v21  ;;  %v2164_v32 = vmul.f32 %v2157_v16, %v3761_v50  ;;  %v2163_v37 = vmul.f32 %v2153_v31, %v3809_v24  ;;  %3037 = vmatmul.mubr.msk.f32.gmra.mrb[12].mxu1 %vm112_vm2, %v3021_v54  ;;  %v3040_v21 = vld [vmem:[%s4817_s3 + $0x108] sm:$0xff] }
 0x5f5   :  { %3215 = vmatpush1.bf16.msra.mxu0 %v3214_v9  ;;  %1920 = vmatprep.mubr.f32.mxu0 %v3579_v7  ;;  %v3218_v33 = vpack.c.bf16 %v2161_v27, %v2159_v29  ;;  %v3051_v27 = vld [vmem:[%s4817_s3 + $0x160] sm:$0xff] }
 0x5f6   :  { %3217 = vmatprep.subr.bf16.mxu0 %v3216_v22  ;;  %v2150_v9 = vpop.permute.xlu0 %2149  ;;  %1731 = vmatprep.mubr.f32.mxu1 %v3579_v7 }
 0x5f7   :  { %v2158_v17 = vsel %vm444_vm1, %v2150_v9, %v2142_v49  ;;  %v2154_v20 = vsel %vm444_vm1, %v2142_v49, %v2150_v9 }
 0x5f8   :  { %3065 = vmatmul.mubr.msk.f32.gmra.mrb[20].mxu0 %vm112_vm2, %v3057_v36  ;;  %v2166_v28 = vmul.f32 %v2158_v17, %v3761_v50  ;;  %v2165_v34 = vmul.f32 %v2154_v20, %v3809_v24  ;;  %v3073_v50 = vld [vmem:[%s4816_s2 + $0x1d0] sm:$0xff]  ;;  %v3074_v24 = vld [vmem:[%s4816_s2 + $0x1d8] sm:$0xff]  ;;  %3038 = vmatmul.mubr.msk.f32.gmra.mrb[14].mxu1 %vm112_vm2, %v3022_v52 }
 0x5f9   :  { %1926 = vmatprep.mubr.f32.mxu0 %v3579_v7  ;;  %2519 = vmatprep.mubr.f32.mxu1 %v3579_v7 }
 0x5fa   :  { %v3220_v35 = vpack.c.bf16 %v2166_v28, %v2164_v32  ;;  %v3222_v12 = vpack.c.bf16 %v2165_v34, %v2163_v37  ;;  %v3052_v28 = vld [vmem:[%s4817_s3 + $0x168] sm:$0xff] }
 0x5fc   :  { %3066 = vmatmul.mubr.msk.f32.gmra.mrb[22].mxu0 %vm112_vm2, %v3058_v39  ;;  %v3049_v39 = vld [vmem:[%s4817_s3 + $0x150] sm:$0xff] }
 0x5fd   :  { %1932 = vmatprep.mubr.f32.mxu0 %v3579_v7 }
 0x600   :  { %3067 = vmatmul.mubr.msk.f32.gmra.mrb[24].mxu0 %vm112_vm2, %v3059_v46 }
 0x601   :  { %1938 = vmatprep.mubr.f32.mxu0 %v3579_v7 }
 0x604   :  { %3068 = vmatmul.mubr.msk.f32.gmra.mrb[26].mxu0 %vm112_vm2, %v3060_v56  ;;  %v3050_v56 = vld [vmem:[%s4817_s3 + $0x158] sm:$0xff] }
 0x605   :  { %1944 = vmatprep.mubr.f32.mxu0 %v3579_v7 }
 0x608   :  { %3069 = vmatmul.mubr.msk.f32.gmra.mrb[28].mxu0 %vm112_vm2, %v3061_v6  ;;  %v3041_v6 = vld [vmem:[%s4817_s3 + $0x110] sm:$0xff] }
 0x609   :  { %1950 = vmatprep.mubr.f32.mxu0 %v3579_v7 }
 0x60c   :  { %3070 = vmatmul.mubr.msk.f32.gmra.mrb[30].mxu0 %vm112_vm2, %v3062_v15 }
 0x60d   :  { %2070 = vmatprep.mubr.f32.mxu0 %v3579_v7 }
 0x610   :  { %3079 = vmatmul.mubr.msk.f32.vlgmr.msra.gmra.mrb[16].mxu0 %vm112_vm2, %v3071_v30  ;;  %v3043_v30 = vld [vmem:[%s4817_s3 + $0x120] sm:$0xff] }
 0x611   :  { %3219 = vmatpush1.bf16.msra.mxu0 %v3218_v33  ;;  %2076 = vmatprep.mubr.f32.mxu0 %v3579_v7  ;;  %v3044_v33 = vld [vmem:[%s4817_s3 + $0x128] sm:$0xff] }
 0x612   :  { %3221 = vmatprep.subr.bf16.mxu0 %v3220_v35 }
 0x614   :  { %3080 = vmatmul.mubr.msk.f32.gmra.mrb[18].mxu0 %vm112_vm2, %v3072_v38  ;;  %v3053_v38 = vld [vmem:[%s4817_s3 + $0x170] sm:$0xff] }
 0x615   :  { %3223 = vmatpush1.bf16.msra.mxu0 %v3222_v12  ;;  %2082 = vmatprep.mubr.f32.mxu0 %v3579_v7 }
 0x618   :  { %3081 = vmatmul.mubr.msk.f32.gmra.mrb[20].mxu0 %vm112_vm2, %v3073_v50 }
 0x619   :  { %2088 = vmatprep.mubr.f32.mxu0 %v3579_v7 }
 0x61c   :  { %3082 = vmatmul.mubr.msk.f32.gmra.mrb[22].mxu0 %vm112_vm2, %v3074_v24  ;;  %v3054_v24 = vld [vmem:[%s4817_s3 + $0x178] sm:$0xff] }
 0x61d   :  { %2094 = vmatprep.mubr.f32.mxu0 %v3579_v7 }
 0x620   :  { %3083 = vmatmul.mubr.msk.f32.gmra.mrb[24].mxu0 %vm112_vm2, %v3075_v40 }
 0x621   :  { %2100 = vmatprep.mubr.f32.mxu0 %v3579_v7 }
 0x624   :  { %3084 = vmatmul.mubr.msk.f32.gmra.mrb[26].mxu0 %vm112_vm2, %v3076_v41 }
 0x625   :  { %2106 = vmatprep.mubr.f32.mxu0 %v3579_v7 }
 0x628   :  { %3085 = vmatmul.mubr.msk.f32.gmra.mrb[28].mxu0 %vm112_vm2, %v3077_v42 }
 0x629   :  { %2112 = vmatprep.mubr.f32.mxu0 %v3579_v7 }
 0x62c   :  { %3086 = vmatmul.mubr.msk.f32.gmra.mrb[30].mxu0 %vm112_vm2, %v3078_v43 }
 0x62d   :  { %2264 = vmatprep.mubr.f32.mxu0 %v3579_v7 }
 0x630   :  { %3095 = vmatmul.mubr.msk.f32.vlgmr.msra.gmra.mrb[16].mxu0 %vm112_vm2, %v3087_v44 }
 0x631   :  { %2270 = vmatprep.mubr.f32.mxu0 %v3579_v7 }
 0x634   :  { %3096 = vmatmul.mubr.msk.f32.gmra.mrb[18].mxu0 %vm112_vm2, %v3088_v23  ;;  %v3045_v23 = vld [vmem:[%s4817_s3 + $0x130] sm:$0xff] }
 0x635   :  { %2276 = vmatprep.mubr.f32.mxu0 %v3579_v7 }
 0x638   :  { %3097 = vmatmul.mubr.msk.f32.gmra.mrb[20].mxu0 %vm112_vm2, %v3089_v2 }
 0x639   :  { %2282 = vmatprep.mubr.f32.mxu0 %v3579_v7 }
 0x63c   :  { %3098 = vmatmul.mubr.msk.f32.gmra.mrb[22].mxu0 %vm112_vm2, %v3090_v45 }
 0x63d   :  { %2288 = vmatprep.mubr.f32.mxu0 %v3579_v7 }
 0x640   :  { %3099 = vmatmul.mubr.msk.f32.gmra.mrb[24].mxu0 %vm112_vm2, %v3091_v1  ;;  %v3046_v1 = vld [vmem:[%s4817_s3 + $0x138] sm:$0xff] }
 0x641   :  { %2294 = vmatprep.mubr.f32.mxu0 %v3579_v7 }
 0x644   :  { %3100 = vmatmul.mubr.msk.f32.gmra.mrb[26].mxu0 %vm112_vm2, %v3092_v25 }
 0x645   :  { %2300 = vmatprep.mubr.f32.mxu0 %v3579_v7 }
 0x648   :  { %3101 = vmatmul.mubr.msk.f32.gmra.mrb[28].mxu0 %vm112_vm2, %v3093_v3 }
 0x649   :  { %2306 = vmatprep.mubr.f32.mxu0 %v3579_v7 }
 0x64c   :  { %3102 = vmatmul.mubr.msk.f32.gmra.mrb[30].mxu0 %vm112_vm2, %v3094_v48 }
 0x64d   :  { %2682 = vmatprep.mubr.f32.mxu0 %v3579_v7 }
 0x703   :  { %v2266_v53 = vpop.f32.mrb[16].mxu0 }
 0x704   :  { %v2268_v55 = vpop.f32.mrb[17].mxu0  ;;  %v3304_v46 = vadd.f32 %v3039_v19, %v2266_v53 }
 0x705   :  { %v3305_v57 = vadd.f32 %v3040_v21, %v2268_v55 }
 0x707   :  { %v2272_v5 = vpop.f32.mrb[18].mxu0 }
 0x708   :  { %v2274_v58 = vpop.f32.mrb[19].mxu0  ;;  %v3306_v16 = vadd.f32 %v3041_v6, %v2272_v5 }
 0x709   :  { %v3307_v29 = vadd.f32 %v3042_v0, %v2274_v58 }
 0x70b   :  { %v2278_v59 = vpop.f32.mrb[20].mxu0 }
 0x70c   :  { %v2280_v61 = vpop.f32.mrb[21].mxu0  ;;  %v3308_v12 = vadd.f32 %v3043_v30, %v2278_v59 }
 0x70d   :  { %v3309_v40 = vadd.f32 %v3044_v33, %v2280_v61 }
 0x70f   :  { %v4640_v8 = vpop.f32.mrb[22].mxu0 }
 0x710   :  { %v4642_v62 = vpop.f32.mrb[23].mxu0  ;;  %v3310_v54 = vadd.f32 %v3045_v23, %v4640_v8  ;;  %v728_v23 = vpop.permute.xlu0 %727 }
 0x711   :  { %v3311_v55 = vadd.f32 %v3046_v1, %v4642_v62 }
 0x713   :  { %v2290_v63 = vpop.f32.mrb[24].mxu0 }
 0x714   :  { %v3312_v47 = vadd.f32 %v3047_v14, %v2290_v63  ;;  %v2292_v22 = vpop.f32.mrb[25].mxu0 }
 0x715   :  { %v3313_v36 = vadd.f32 %v3048_v18, %v2292_v22 }
 0x716   :  { %v2337_v49 = vmul.f32 0.5, %v3312_v47 }
 0x717   :  { %v2338_v9 = vmul.f32 0.5, %v3313_v36  ;;  %v2296_v60 = vpop.f32.mrb[26].mxu0 }
 0x718   :  { %3506 = vtanh.f32 %v2337_v49  ;;  %v3314_v17 = vadd.f32 %v3049_v39, %v2296_v60  ;;  %v2298_v15 = vpop.f32.mrb[27].mxu0 }
 0x719   :  { %3508 = vtanh.f32 %v2338_v9  ;;  %v3315_v26 = vadd.f32 %v3050_v56, %v2298_v15 }
 0x71a   :  { %3510 = vtanh.f32 %v3304_v46  ;;  %v2339_v20 = vmul.f32 0.5, %v3314_v17 }
 0x71b   :  { %3512 = vtanh.f32 %v3305_v57  ;;  %v2340_v31 = vmul.f32 0.5, %v3315_v26  ;;  %v2302_v32 = vpop.f32.mrb[28].mxu0 }
 0x71c   :  { %3514 = vtanh.f32 %v2339_v20  ;;  %v3316_v34 = vadd.f32 %v3051_v27, %v2302_v32  ;;  %v2304_v35 = vpop.f32.mrb[29].mxu0 }
 0x71d   :  { %3516 = vtanh.f32 %v2340_v31  ;;  %v3317_v37 = vadd.f32 %v3052_v28, %v2304_v35 }
 0x71e   :  { %3518 = vtanh.f32 %v3306_v16  ;;  %v2341_v50 = vmul.f32 0.5, %v3316_v34 }
 0x71f   :  { %3520 = vtanh.f32 %v3307_v29  ;;  %v2342_v41 = vmul.f32 0.5, %v3317_v37  ;;  %v2308_v42 = vpop.f32.mrb[30].mxu0 }
 0x720   :  { %3522 = vtanh.f32 %v2341_v50  ;;  %v3318_v43 = vadd.f32 %v3053_v38, %v2308_v42  ;;  %v2310_v44 = vpop.f32.mrb[31].mxu0  ;;  %v3103_v38 = vld [vmem:[%s4818_s4 + $0x80] sm:$0xff]  ;;  %v3105_v50 = vld [vmem:[%s4818_s4 + $0x90] sm:$0xff] }
 0x721   :  { %3524 = vtanh.f32 %v2342_v41  ;;  %v3319_v2 = vadd.f32 %v3054_v24, %v2310_v44  ;;  %v3106_v24 = vld [vmem:[%s4818_s4 + $0x98] sm:$0xff]  ;;  %v3108_v41 = vld [vmem:[%s4818_s4 + $0xa8] sm:$0xff]  ;;  %v3109_v42 = vld [vmem:[%s4818_s4 + $0xb0] sm:$0xff]  ;;  %v723_v44 = vpop.permute.xlu1 %722 }
 0x722   :  { %v3507_v45 = vpop.eup %3506  ;;  %3526 = vtanh.f32 %v3308_v12  ;;  %v2343_v25 = vmul.f32 0.5, %v3318_v43  ;;  %v3104_v12 = vld [vmem:[%s4818_s4 + $0x88] sm:$0xff]  ;;  %v3110_v43 = vld [vmem:[%s4818_s4 + $0xb8] sm:$0xff] }
 0x723   :  { %v3509_v3 = vpop.eup %3508  ;;  %3528 = vtanh.f32 %v3309_v40  ;;  %v2353_v48 = vadd.f32 1.0, %v3507_v45  ;;  %v2344_v4 = vmul.f32 0.5, %v3319_v2  ;;  %v3107_v40 = vld [vmem:[%s4818_s4 + $0xa0] sm:$0xff]  ;;  %v1589_v45 = vpop.permute.xlu0 %1588 }
 0x724   :  { %v3511_v51 = vpop.eup %3510  ;;  %v2354_v52 = vadd.f32 1.0, %v3509_v3  ;;  %3530 = vtanh.f32 %v2343_v25 }
 0x725   :  { %v3513_v53 = vpop.eup %3512  ;;  %v2361_v5 = vmul.f32 0.5, %v2353_v48  ;;  %3532 = vtanh.f32 %v2344_v4  ;;  %v1584_v2 = vpop.permute.xlu1 %1583 }
 0x726   :  { %v3515_v58 = vpop.eup %3514  ;;  %v2362_v59 = vmul.f32 0.5, %v2354_v52  ;;  %3534 = vtanh.f32 %v3310_v54 }
 0x727   :  { %v3517_v61 = vpop.eup %3516  ;;  %v2369_v14 = vmul.f32 %v3511_v51, %v2361_v5  ;;  %v2355_v18 = vadd.f32 1.0, %v3515_v58  ;;  %3536 = vtanh.f32 %v3311_v55  ;;  %v2419_v51 = vpop.permute.xlu0 %2418 }
 0x728   :  { %v3519_v19 = vpop.eup %3518  ;;  %v2356_v63 = vadd.f32 1.0, %v3517_v61  ;;  %v2370_v21 = vmul.f32 %v3513_v53, %v2362_v59  ;;  %v3264_v59 = vadd.f32 %v1584_v2, %v723_v44 }
 0x729   :  { %v3521_v47 = vpop.eup %3520  ;;  %v2363_v22 = vmul.f32 0.5, %v2355_v18  ;;  %v2414_v3 = vpop.permute.xlu1 %2413  ;;  %v3270_v18 = vadd.f32 %v1589_v45, %v728_v23 }
 0x72a   :  { %v3523_v8 = vpop.eup %3522  ;;  %v2364_v36 = vmul.f32 0.5, %v2356_v63 }
 0x72b   :  { %v3525_v39 = vpop.eup %3524  ;;  %v2371_v46 = vmul.f32 %v3519_v19, %v2363_v22  ;;  %v2357_v49 = vadd.f32 1.0, %v3523_v8  ;;  %v738_v55 = vpop.permute.xlu0 %737  ;;  %v3265_v19 = vadd.f32 %v3264_v59, %v2414_v3 }
 0x72c   :  { %v3527_v62 = vpop.eup %3526  ;;  %v2358_v56 = vadd.f32 1.0, %v3525_v39  ;;  %v2372_v57 = vmul.f32 %v3521_v47, %v2364_v36  ;;  %v3271_v47 = vadd.f32 %v3270_v18, %v2419_v51 }
 0x72d   :  { %v3529_v6 = vpop.eup %3528  ;;  %v2365_v9 = vmul.f32 0.5, %v2357_v49  ;;  %v3226_v60 = vpack.c.bf16 %v2371_v46, %v2369_v14  ;;  %v733_v53 = vpop.permute.xlu1 %732 }
 0x72e   :  { %v3531_v0 = vpop.eup %3530  ;;  %v2366_v17 = vmul.f32 0.5, %v2358_v56  ;;  %v3224_v15 = vpack.c.bf16 %v2372_v57, %v2370_v21 }
 0x72f   :  { %v3533_v26 = vpop.eup %3532  ;;  %v2373_v27 = vmul.f32 %v3527_v62, %v2365_v9  ;;  %v2359_v16 = vadd.f32 1.0, %v3531_v0  ;;  %v1599_v21 = vpop.permute.xlu0 %1598 }
 0x730   :  { %v2360_v20 = vadd.f32 1.0, %v3533_v26  ;;  %3225 = vmatprep.subr.bf16.mxu1 %v3224_v15  ;;  %v2374_v28 = vmul.f32 %v3529_v6, %v2366_v17  ;;  %v3535_v30 = vpop.eup %3534  ;;  %v3282_v15 = vadd.f32 %v1599_v21, %v738_v55 }
 0x731   :  { %v2367_v29 = vmul.f32 0.5, %v2359_v16  ;;  %3227 = vmatpush1.bf16.msra.mxu1 %v3226_v60  ;;  %v3537_v32 = vpop.eup %3536  ;;  %v1594_v61 = vpop.permute.xlu1 %1593 }
 0x732   :  { %v2368_v31 = vmul.f32 0.5, %v2360_v20  ;;  %v3276_v56 = vadd.f32 %v1594_v61, %v733_v53 }
 0x733   :  { %v2375_v33 = vmul.f32 %v3535_v30, %v2367_v29  ;;  %v2429_v9 = vpop.permute.xlu0 %2428 }
 0x734   :  { %v2376_v34 = vmul.f32 %v3537_v32, %v2368_v31 }
 0x735   :  { %v3230_v35 = vpack.c.bf16 %v2375_v33, %v2373_v27  ;;  %v2424_v49 = vpop.permute.xlu1 %2423 }
 0x736   :  { %v3228_v37 = vpack.c.bf16 %v2376_v34, %v2374_v28  ;;  %v3277_v26 = vadd.f32 %v3276_v56, %v2424_v49  ;;  %v3283_v28 = vadd.f32 %v3282_v15, %v2429_v9 }
 0x737   :  { %v2594_v3 = vpop.permute.xlu0 %2593 }
 0x738   :  { %3229 = vmatprep.subr.bf16.mxu1 %v3228_v37 }
 0x739   :  { %3231 = vmatpush1.bf16.msra.mxu1 %v3230_v35  ;;  %v2589_v44 = vpop.permute.xlu1 %2588 }
 0x73b   :  { %v2604_v49 = vpop.permute.xlu0 %2603 }
 0x73c   :  { %3119 = vmatmul.mubr.msk.f32.vlgmr.msra.gmra.mrb[40].mxu1 %vm112_vm2, %v3103_v38 }
 0x73d   :  { %2523 = vmatprep.mubr.f32.mxu1 %v3579_v7 }
 0x740   :  { %3120 = vmatmul.mubr.msk.f32.gmra.mrb[42].mxu1 %vm112_vm2, %v3104_v12 }
 0x741   :  { %2527 = vmatprep.mubr.f32.mxu1 %v3579_v7 }
 0x744   :  { %3121 = vmatmul.mubr.msk.f32.gmra.mrb[44].mxu1 %vm112_vm2, %v3105_v50 }
 0x745   :  { %2531 = vmatprep.mubr.f32.mxu1 %v3579_v7 }
 0x748   :  { %3122 = vmatmul.mubr.msk.f32.gmra.mrb[46].mxu1 %vm112_vm2, %v3106_v24 }
 0x749   :  { %2535 = vmatprep.mubr.f32.mxu1 %v3579_v7 }
 0x74c   :  { %3123 = vmatmul.mubr.msk.f32.gmra.mrb[8].mxu1 %vm112_vm2, %v3107_v40  ;;  %v2576_v40 = vld [vmem:[%s4820_s6] sm:$0xff] }
 0x74d   :  { %2541 = vmatprep.mubr.f32.mxu1 %v3579_v7 }
 0x750   :  { %3124 = vmatmul.mubr.msk.f32.gmra.mrb[10].mxu1 %vm112_vm2, %v3108_v41  ;;  %v2577_v41 = vld [vmem:[%s4820_s6 + $0x8] sm:$0xff] }
 0x751   :  { %2547 = vmatprep.mubr.f32.mxu1 %v3579_v7 }
 0x754   :  { %3125 = vmatmul.mubr.msk.f32.gmra.mrb[12].mxu1 %vm112_vm2, %v3109_v42  ;;  %v2578_v42 = vld [vmem:[%s4820_s6 + $0x10] sm:$0xff] }
 0x755   :  { %2553 = vmatprep.mubr.f32.mxu1 %v3579_v7 }
 0x758   :  { %3126 = vmatmul.mubr.msk.f32.gmra.mrb[14].mxu1 %vm112_vm2, %v3110_v43  ;;  %v2579_v43 = vld [vmem:[%s4820_s6 + $0x18] sm:$0xff] }
 0x759   :  { %2856 = vmatprep.mubr.f32.mxu1 %v3579_v7 }
 0x80f   :  { %v2521_v1 = vpop.f32.mrb[40].mxu1 }
 0x810   :  { %v2522_v25 = vpop.f32.mrb[41].mxu1 }
 0x813   :  { %v2525_v48 = vpop.f32.mrb[42].mxu1 }
 0x814   :  { %v2526_v4 = vpop.f32.mrb[43].mxu1 }
 0x817   :  { %v2529_v54 = vpop.f32.mrb[44].mxu1 }
 0x818   :  { %v2530_v52 = vpop.f32.mrb[45].mxu1 }
 0x81b   :  { %v2533_v5 = vpop.f32.mrb[46].mxu1 }
 0x81c   :  { %v2534_v58 = vpop.f32.mrb[47].mxu1 }
 0x81d   :  { %v2599_v58 = vpop.permute.xlu1 %2598 }
 0x81f   :  { %v2537_v14 = vpop.f32.mrb[8].mxu1 }
 0x820   :  { %v2539_v63 = vpop.f32.mrb[9].mxu1  ;;  %v3266_v22 = vadd.f32 %v3265_v19, %v2537_v14 }
 0x821   :  { %v3269_v8 = vadd.f32 %v3265_v19, %v2539_v63 }
 0x822   :  { %v2568_v57 = vmul.f32 0.57735026, %v3266_v22 }
 0x823   :  { %v2543_v36 = vpop.f32.mrb[10].mxu1  ;;  %v2569_v60 = vmul.f32 0.57735026, %v3269_v8 }
 0x824   :  { %v3272_v39 = vadd.f32 %v3271_v47, %v2543_v36  ;;  %v2545_v46 = vpop.f32.mrb[11].mxu1 }
 0x825   :  { %v3275_v62 = vadd.f32 %v3271_v47, %v2545_v46 }
 0x826   :  { %v2570_v6 = vmul.f32 0.57735026, %v3272_v39 }
 0x827   :  { %v2571_v0 = vmul.f32 0.57735026, %v3275_v62  ;;  %v2549_v17 = vpop.f32.mrb[12].mxu1 }
 0x828   :  { %v3234_v27 = vpack.c.bf16 %v2570_v6, %v2568_v57  ;;  %v2551_v16 = vpop.f32.mrb[13].mxu1  ;;  %v3278_v29 = vadd.f32 %v3277_v26, %v2549_v17 }
 0x829   :  { %v3232_v20 = vpack.c.bf16 %v2571_v0, %v2569_v60  ;;  %v3281_v30 = vadd.f32 %v3277_v26, %v2551_v16 }
 0x82a   :  { %v2572_v35 = vmul.f32 0.57735026, %v3278_v29 }
 0x82b   :  { %v2555_v31 = vpop.f32.mrb[14].mxu1  ;;  %3233 = vmatprep.subr.bf16.mxu0 %v3232_v20  ;;  %v2573_v38 = vmul.f32 0.57735026, %v3281_v30 }
 0x82c   :  { %v3284_v32 = vadd.f32 %v3283_v28, %v2555_v31  ;;  %v2557_v33 = vpop.f32.mrb[15].mxu1  ;;  %3235 = vmatpush1.bf16.msra.mxu0 %v3234_v27 }
 0x82d   :  { %v3287_v34 = vadd.f32 %v3283_v28, %v2557_v33 }
 0x82e   :  { %v2574_v37 = vmul.f32 0.57735026, %v3284_v32 }
 0x82f   :  { %v2575_v12 = vmul.f32 0.57735026, %v3287_v34 }
 0x830   :  { %v3238_v50 = vpack.c.bf16 %v2574_v37, %v2572_v35 }
 0x831   :  { %v3236_v24 = vpack.c.bf16 %v2575_v12, %v2573_v38 }
 0x833   :  { %3237 = vmatprep.subr.bf16.mxu0 %v3236_v24 }
 0x834   :  { %3239 = vmatpush1.bf16.msra.mxu0 %v3238_v50 }
 0x837   :  { %3131 = vmatmul.mubr.msk.f32.vlgmr.msra.gmra.mrb[32].mxu0 %vm112_vm2, %v2576_v40 }
 0x838   :  { %2688 = vmatprep.mubr.f32.mxu0 %v3579_v7 }
 0x83b   :  { %3132 = vmatmul.mubr.msk.f32.gmra.mrb[34].mxu0 %vm112_vm2, %v2577_v41 }
 0x83c   :  { %2694 = vmatprep.mubr.f32.mxu0 %v3579_v7 }
 0x83f   :  { %3133 = vmatmul.mubr.msk.f32.gmra.mrb[36].mxu0 %vm112_vm2, %v2578_v42 }
 0x840   :  { %2700 = vmatprep.mubr.f32.mxu0 %v3579_v7 }
 0x843   :  { %3134 = vmatmul.mubr.msk.f32.gmra.mrb[38].mxu0 %vm112_vm2, %v2579_v43 }
 0x90a   :  { %v2684_v23 = vpop.f32.mrb[32].mxu0 }
 0x90b   :  { %v4753_v2 = vadd.f32 %v2684_v23, %v2589_v44  ;;  %v2686_v45 = vpop.f32.mrb[33].mxu0 }
 0x90c   :  { %v4755_v1 = vadd.f32 %v2686_v45, %v2589_v44 }
 0x90d   :  { %v2715_v25 = vmul.f32 0.044715, %v4753_v2 }
 0x90e   :  { %v2716_v48 = vmul.f32 0.044715, %v4755_v1  ;;  %v2690_v4 = vpop.f32.mrb[34].mxu0 }
 0x90f   :  { %v2723_v7 = vmul.f32 %v2715_v25, %v4753_v2  ;;  %v4760_v51 = vadd.f32 %v2690_v4, %v2594_v3  ;;  %v2692_v54 = vpop.f32.mrb[35].mxu0 }
 0x910   :  { %v2724_v52 = vmul.f32 %v2716_v48, %v4755_v1  ;;  %v4763_v53 = vadd.f32 %v2692_v54, %v2594_v3  ;;  %v2707_v48 = vmul.f32 0.5, %v4753_v2  ;;  %v2708_v54 = vmul.f32 0.5, %v4755_v1 }
 0x911   :  { %v2731_v55 = vmul.f32 %v2723_v7, %v4753_v2  ;;  %v2717_v5 = vmul.f32 0.044715, %v4760_v51  ;;  %v2709_v4 = vmul.f32 0.5, %v4760_v51 }
 0x912   :  { %v2732_v59 = vmul.f32 %v2724_v52, %v4755_v1  ;;  %v2718_v61 = vmul.f32 0.044715, %v4763_v53  ;;  %v2696_v14 = vpop.f32.mrb[36].mxu0  ;;  %v2710_v52 = vmul.f32 0.5, %v4763_v53 }
 0x913   :  { %v2739_v18 = vadd.f32 %v2731_v55, %v4753_v2  ;;  %v2725_v19 = vmul.f32 %v2717_v5, %v4760_v51  ;;  %v4771_v63 = vadd.f32 %v2696_v14, %v2599_v58  ;;  %v2698_v21 = vpop.f32.mrb[37].mxu0 }
 0x914   :  { %v2726_v47 = vmul.f32 %v2718_v61, %v4763_v53  ;;  %v4774_v22 = vadd.f32 %v2698_v21, %v2599_v58  ;;  %v2740_v8 = vadd.f32 %v2732_v59, %v4755_v1 }
 0x915   :  { %v2747_v36 = vmul.f32 0.7978846, %v2739_v18  ;;  %v2733_v39 = vmul.f32 %v2725_v19, %v4760_v51  ;;  %v2719_v46 = vmul.f32 0.044715, %v4771_v63 }
 0x916   :  { %v2734_v62 = vmul.f32 %v2726_v47, %v4763_v53  ;;  %v2720_v56 = vmul.f32 0.044715, %v4774_v22  ;;  %v2702_v57 = vpop.f32.mrb[38].mxu0  ;;  %v2748_v6 = vmul.f32 0.7978846, %v2740_v8 }
 0x917   :  { %3538 = vtanh.f32 %v2747_v36  ;;  %v2741_v9 = vadd.f32 %v2733_v39, %v4760_v51  ;;  %v2727_v60 = vmul.f32 %v2719_v46, %v4771_v63  ;;  %v2703_v0 = vadd.f32 %v2702_v57, %v2604_v49  ;;  %v2704_v17 = vpop.f32.mrb[39].mxu0 }
 0x918   :  { %v2728_v15 = vmul.f32 %v2720_v56, %v4774_v22  ;;  %v2705_v26 = vadd.f32 %v2704_v17, %v2604_v49  ;;  %v2742_v27 = vadd.f32 %v2734_v62, %v4763_v53  ;;  %3540 = vtanh.f32 %v2748_v6  ;;  %v2580_v17 = vld [vmem:[%s4820_s6 + $0x20] sm:$0x1]  ;;  %s3554_s6 = scalar_lea.vmem %s2893_s18, 32 }
 0x919   :  { %v2749_v16 = vmul.f32 0.7978846, %v2741_v9  ;;  %v2735_v20 = vmul.f32 %v2727_v60, %v4771_v63  ;;  %v2721_v28 = vmul.f32 0.044715, %v2703_v0  ;;  %v2711_v51 = vmul.f32 0.5, %v4771_v63  ;;  %p3555_p0 = scmp.ne.s32.totalorder %s2893_s18, %s3554_s6  ;;  %p3560_p2 = scmp.lt.s32.totalorder %s3554_s6, %s3554_s6 }
 0x91a   :  { %v2736_v29 = vmul.f32 %v2728_v15, %v4774_v22  ;;  %v2722_v30 = vmul.f32 0.044715, %v2705_v26  ;;  %v2750_v31 = vmul.f32 0.7978846, %v2742_v27  ;;  %v2713_v1 = vmul.f32 0.5, %v2703_v0  ;;  %v2783_v15 = vpop.permute.xlu1 %2782 }
 0x91b   :  { %3542 = vtanh.f32 %v2749_v16  ;;  %v2743_v32 = vadd.f32 %v2735_v20, %v4771_v63  ;;  %v2729_v33 = vmul.f32 %v2721_v28, %v2703_v0  ;;  %v2712_v53 = vmul.f32 0.5, %v4774_v22  ;;  %p3561_p3 = por %p3560_p2, %p3559_p1 }
 0x91c   :  { %v2730_v34 = vmul.f32 %v2722_v30, %v2705_v26  ;;  %3544 = vtanh.f32 %v2750_v31  ;;  %v2744_v35 = vadd.f32 %v2736_v29, %v4774_v22  ;;  %v2714_v46 = vmul.f32 0.5, %v2705_v26 }
 0x91d   :  { %v2751_v37 = vmul.f32 0.7978846, %v2743_v32  ;;  %v2737_v38 = vmul.f32 %v2729_v33, %v2703_v0  ;;  %v3584_v63 = vmov 1966171168   ;;  %p3562_p4 = pnand %p3561_p3, %p3555_p0 }
 0x91e   :  { %v2738_v12 = vmul.f32 %v2730_v34, %v2705_v26  ;;  %v2752_v50 = vmul.f32 0.7978846, %v2744_v35 }
 0x91f   :  { %3546 = vtanh.f32 %v2751_v37  ;;  %v2745_v24 = vadd.f32 %v2737_v38, %v2703_v0  ;;  %v2867_v0 = vunpack.c.l.s4 %v3584_v63 }
 0x920   :  { %v2746_v40 = vadd.f32 %v2738_v12, %v2705_v26  ;;  %3548 = vtanh.f32 %v2752_v50  ;;  %v2788_v26 = vrot.slane %v2783_v15, %v3715_v13 }
 0x921   :  { %v3539_v41 = vpop.eup %3538  ;;  %v2753_v42 = vmul.f32 0.7978846, %v2745_v24  ;;  %v2868_v22 = vunpack.c.0.s8 %v2867_v0 }
 0x922   :  { %v3541_v43 = vpop.eup %3540  ;;  %v2754_v44 = vmul.f32 0.7978846, %v2746_v40  ;;  %v2763_v23 = vadd.f32 1.0, %v3539_v41 }
 0x923   :  { %3550 = vtanh.f32 %v2753_v42  ;;  %v2764_v25 = vadd.f32 1.0, %v3541_v43  ;;  %v2871_v29 = vsub.s32 %v2868_v22, %v3709_v11 }
 0x924   :  { %3552 = vtanh.f32 %v2754_v44  ;;  %v2771_v5 = vmul.f32 %v2763_v23, %v2707_v48 }
 0x925   :  { %v3543_v45 = vpop.eup %3542  ;;  %v2772_v61 = vmul.f32 %v2764_v25, %v2708_v54 }
 0x926   :  { %v3545_v3 = vpop.eup %3544  ;;  %v2765_v7 = vadd.f32 1.0, %v3543_v45 }
 0x927   :  { %v2766_v55 = vadd.f32 1.0, %v3545_v3 }
 0x928   :  { %v2773_v58 = vmul.f32 %v2765_v7, %v2709_v4 }
 0x929   :  { %v3547_v59 = vpop.eup %3546  ;;  %v2774_v14 = vmul.f32 %v2766_v55, %v2710_v52 }
 0x92a   :  { %v3549_v18 = vpop.eup %3548  ;;  %v3242_v19 = vpack.c.bf16 %v2773_v58, %v2771_v5  ;;  %v2767_v47 = vadd.f32 1.0, %v3547_v59 }
 0x92b   :  { %v3240_v21 = vpack.c.bf16 %v2774_v14, %v2772_v61  ;;  %v2768_v2 = vadd.f32 1.0, %v3549_v18 }
 0x92c   :  { %v2775_v62 = vmul.f32 %v2767_v47, %v2711_v51 }
 0x92d   :  { %v3551_v8 = vpop.eup %3550  ;;  %3241 = vmatprep.subr.bf16.mxu1 %v3240_v21  ;;  %v2776_v57 = vmul.f32 %v2768_v2, %v2712_v53 }
 0x92e   :  { %v3553_v36 = vpop.eup %3552  ;;  %3243 = vmatpush1.bf16.msra.mxu1 %v3242_v19  ;;  %v2769_v39 = vadd.f32 1.0, %v3551_v8 }
 0x92f   :  { %v2770_v49 = vadd.f32 1.0, %v3553_v36 }
 0x930   :  { %v2777_v56 = vmul.f32 %v2769_v39, %v2713_v1 }
 0x931   :  { %v2778_v6 = vmul.f32 %v2770_v49, %v2714_v46 }
 0x932   :  { %v3246_v9 = vpack.c.bf16 %v2777_v56, %v2775_v62 }
 0x933   :  { %v3244_v60 = vpack.c.bf16 %v2778_v6, %v2776_v57 }
 0x935   :  { %3245 = vmatprep.subr.bf16.mxu1 %v3244_v60 }
 0x936   :  { %3247 = vmatpush1.bf16.msra.mxu1 %v3246_v9 }
 0x939   :  { %3135 = vmatmul.mubr.msk.f32.vlgmr.msra.gmra.mrb[48].mxu1 %vm112_vm2, %v2580_v17 }
 0xa0c   :  { %v2858_v27 = vpop.f32.mrb[48].mxu1 }
 0xa0d   :  { %v2859_v16 = vadd.f32 %v2858_v27, %v2788_v26  ;;  %v2860_v20 = vpop.f32.mrb[49].mxu1 }
 0xa0e   :  { %v2861_v28 = vadd.f32 %v2860_v20, %v2788_v26 }
 0xa10   :  { %v2865_v30 = vcombine.low %v2859_v16, %v2861_v28 }
 0xa12   :  { %v2872_v31 = vrot.slane %v2865_v30, %v2871_v29 }
 0xa14   :  { %v2879_v32 = vrot.slane %v2872_v31, %v2871_v29 }
 0xa16   :  { %2885 = vst.msk [vmem:[#allocation3] sm:$0x3] %vm2883_vm5, %v2879_v32 }
 0xa17   :  { %3565 = shalt.err (!%p3562_p4)
}
 0xa18   :  { %s3566_s20 = scalar_lea.hbm %s4822_s8, 32 }
 0xa19   :  { %p3567_p5 = scmp.ne.s32.totalorder %s4822_s8, %s3566_s20  ;;  %p3570_p6 = scmp.lt.u32.totalorder %s3566_s20, %s4822_s8 }
 0xa1b   :  { %p3572_p7 = pnand %p3570_p6, %p3567_p5 }
 0xa1d   :  { %3575 = shalt.err (!%p3572_p7)
}
 0xa1e   :  { %2895 = dma.vmem_to_hbm [thread:$0]  %s2893_s18, 32, %s4822_s8, [#allocation4]  }
 0xa1f   :  { %3576 = dma.done.wait [#allocation4], 32  }
 0xa20   :  { %3577 = vsyncadd [#allocation4], 4294967264 }
 0xa21   :  { %2899 = vsyncpa [#allocation4], 1 }

</bundles_post_ra>
